<compile_context>
chip_gen: v7x
topology: tpu7x:2x2x1
jax: 0.10.0
libtpu: 0.0.40
codegen_flags: <defaults>
</compile_context>

<pallas_src>
import functools
import numpy as np
import jax
import jax.numpy as jnp
from jax.experimental import pallas as pl
from jax.experimental.pallas import tpu as pltpu


def _round_up(x, m):
    return (x + m - 1) // m * m


def _pick_block_b(B, T, max_bb=32):
    """Batch block: prefer R = bb*T a multiple of 128 (unmasked output stores);
    among those prefer an even grid with >= 2 steps (v7x's 2 TensorCores);
    otherwise fall back to the largest divisor giving >= 2 steps."""
    divs = [d for d in range(1, B + 1) if B % d == 0 and d <= max_bb]
    if not divs:
        divs = [B]
    aligned_multi = [d for d in divs
                     if (d * T) % 128 == 0 and B // d >= 2 and (B // d) % 2 == 0]
    if aligned_multi:
        return max(aligned_multi)
    aligned = [d for d in divs if (d * T) % 128 == 0]
    if aligned:
        return max(aligned)
    multi = [d for d in divs if B // d >= 2]
    if multi:
        return max(multi)
    return max(divs)


@functools.partial(jax.jit, static_argnames=("block_b",))
def tatt_forward(seq, params, block_b=None):
    B, C, N, T = seq.shape
    f32 = jnp.float32
    CN = C * N
    CNp = _round_up(CN, 128)                 # lane-padded (c, n) axis
    if block_b is None:
        block_b = _pick_block_b(B, T)
    assert B % block_b == 0
    Bb = block_b
    nblk = B // Bb
    R = Bb * T

    # ---------- wrapper-side weight folding (exact up to fp reassociation) ----------
    w_bnl = params["w_bnl"].astype(f32)              # (C,)
    w_bcl = params["w_bcl"].astype(f32)              # (N,)
    wf, bf = params["wf"].astype(f32), params["bf"].astype(f32)   # (N,N,3), (N,)
    wg, bg = params["wg"].astype(f32), params["bg"].astype(f32)   # (C,C,3), (C,)
    U = params["U"].astype(f32)                      # (N, C)
    bmat = params["b"].astype(f32)                   # (T, T)
    v = params["v"].astype(f32)                      # (T, T)

    # 1x1-conv reductions expressed as right-matmuls on the (c, n) lane axis.
    W1 = (w_bnl[:, None, None] * jnp.eye(N, dtype=f32)[None]).reshape(CN, N)   # -> f1^T
    W2 = (jnp.eye(C, dtype=f32)[:, None, :] * w_bcl[None, :, None]).reshape(CN, C)  # -> f1tr^T
    Ut = U.T                                         # (C, N)

    # Per-tap fused RHS: [f-path | g-path with U folded in]  -> (CN, 2N).
    wtaps = [jnp.concatenate([W1 @ wf[:, :, k].T,
                              W2 @ (wg[:, :, k].T @ Ut)], axis=1) for k in range(3)]
    bias_row = jnp.concatenate([bf, bg @ Ut])        # (2N,)

    # ---------- single constant slab: one DMA stream, all pieces at lane 0 ----------
    LW = _round_up(max(2 * N, T), 128)
    Tp = _round_up(T, 8)
    rb = 3 * CNp                                     # bias row offset
    rm = rb + 8                                      # b^T offset
    rv = rm + Tp                                     # v offset
    rows = _round_up(rv + Tp, 8)
    cst = jnp.zeros((rows, LW), f32)
    for k in range(3):
        cst = cst.at[k * CNp:k * CNp + CN, 0:2 * N].set(wtaps[k])
    cst = cst.at[rb, 0:2 * N].set(bias_row)
    cst = cst.at[rm:rm + T, 0:T].set(bmat.T)
    cst = cst.at[rv:rv + T, 0:T].set(v)

    # seq rearranged so rows are (b, t), lanes are (c, n), zero-padded to 128 lanes.
    seq_r = jnp.transpose(seq.astype(f32), (0, 3, 1, 2)).reshape(B, T, CN)
    seq_r = jnp.pad(seq_r, ((0, 0), (0, 0), (0, CNp - CN)))

    def kernel(seq_ref, cst_ref, out_ref):
        # seq_ref: (Bb, T, CNp)   cst_ref: (rows, LW)   out_ref: (1, T, R)
        S = seq_ref[...].reshape(R, CNp)                           # rows = (b, t)

        # Row masks for the +-2 dilated-conv shifts, built in-kernel (no DMA).
        t_idx = jax.lax.broadcasted_iota(jnp.int32, (Bb, T, CNp), 1).reshape(R, CNp)
        S_m2 = jnp.where(t_idx >= 2, pltpu.roll(S, 2, axis=0), 0.0)        # x[t-2], zero-padded
        S_p2 = jnp.where(t_idx < T - 2, pltpu.roll(S, R - 2, axis=0), 0.0)  # x[t+2], zero-padded

        # Fused (1x1 reduction + dilated conv + U) chain: 3 accumulated MXU pushes,
        # each producing both the f-path and g-path columns at once.
        acc = jnp.dot(S_m2, cst_ref[0:CNp, 0:2 * N],
                      preferred_element_type=jnp.float32)
        acc = acc + jnp.dot(S, cst_ref[CNp:2 * CNp, 0:2 * N],
                            preferred_element_type=jnp.float32)
        acc = acc + jnp.dot(S_p2, cst_ref[2 * CNp:3 * CNp, 0:2 * N],
                            preferred_element_type=jnp.float32)
        acc = acc + cst_ref[rb:rb + 1, 0:2 * N]                    # [bf | bg @ U^T]

        oft = acc[:, 0:N].reshape(Bb, T, N)                        # out_f^T per batch
        g_u = acc[:, N:2 * N].reshape(Bb, T, N)                    # (out_g^T @ U^T) per batch

        # E_s^T = sigmoid(out_g^T U^T out_f + b^T), per batch element.
        scores = jnp.einsum("bsn,btn->bst", g_u, oft,
                            preferred_element_type=jnp.float32)    # (Bb, T, T)
        bT = cst_ref[rm:rm + T, 0:T]
        e_sT = pl.reciprocal(1.0 + jnp.exp(-(scores + bT[None])), approx=True)

        # E_p = v @ E_s, emitted as a lane-dense (T, R) slab: ep[t, b*T+s] = E_p[b,t,s].
        vv = cst_ref[rv:rv + T, 0:T]
        ep = jax.lax.dot_general(vv, e_sT.reshape(R, T),
                                 dimension_numbers=(((1,), (1,)), ((), ())),
                                 preferred_element_type=jnp.float32)   # (T, R)
        out_ref[0] = ep

    out = pl.pallas_call(
        kernel,
        out_shape=jax.ShapeDtypeStruct((nblk, T, R), f32),
        grid=(nblk,),
        in_specs=[
            pl.BlockSpec((Bb, T, CNp), lambda i: (i, 0, 0)),   # per-step batch block
            pl.BlockSpec((rows, LW), lambda i: (0, 0)),        # constant slab (single stream)
        ],
        out_specs=pl.BlockSpec((1, T, R), lambda i: (i, 0, 0)),
        compiler_params=pltpu.CompilerParams(
            dimension_semantics=("parallel",)),
    )(seq_r, cst)

    # out[blk, t, bb*T + s] = E_p[blk*Bb + bb, t, s]  ->  (B, T, T)
    return (out.reshape(nblk, T, Bb, T)
               .transpose(0, 2, 1, 3)
               .reshape(B, T, T))


def tatt_reference(seq, params):
    """Pure-JAX reference mirroring the PyTorch forward semantics."""
    w_bnl, w_bcl = params["w_bnl"], params["w_bcl"]
    wf, bf = params["wf"], params["bf"]
    wg, bg = params["wg"], params["bg"]
    U, bmat, v = params["U"], params["b"], params["v"]
    T = seq.shape[-1]

    f1 = jnp.einsum("c,bcnt->bnt", w_bnl, seq)      # dim_reduction_bnl + squeeze
    f1tr = jnp.einsum("n,bcnt->bct", w_bcl, seq)    # dim_reduction_bcl + squeeze

    def dconv(x, w, bias):                          # Conv1d k=3, dilation=2, pad=2
        xp = jnp.pad(x, ((0, 0), (0, 0), (2, 2)))
        return (jnp.einsum("oi,bit->bot", w[:, :, 0], xp[:, :, 0:T])
                + jnp.einsum("oi,bit->bot", w[:, :, 1], xp[:, :, 2:T + 2])
                + jnp.einsum("oi,bit->bot", w[:, :, 2], xp[:, :, 4:T + 4])
                + bias[None, :, None])

    ff = dconv(f1, wf, bf)
    gg = dconv(f1tr, wg, bg)
    e_s = jax.nn.sigmoid(jnp.einsum("bnt,nc,bcs->bts", ff, U, gg) + bmat)
    return jnp.einsum("ts,bsq->btq", v, e_s)


if __name__ == "__main__":
    # Small shapes consistent with the module: c_in=4, num_nodes=16, tem_size=24.
    # B=16 -> block_b=16 gives R=384 (128-aligned, lane-dense output stores).
    B, C, N, T = 16, 4, 16, 24
    key = jax.random.PRNGKey(0)
    ks = jax.random.split(key, 9)
    params = dict(
        w_bnl=jax.random.normal(ks[0], (C,), jnp.float32) * 0.3,       # Conv2d(c_in,1,1x1) weight
        w_bcl=jax.random.normal(ks[1], (N,), jnp.float32) * 0.3,       # Conv2d(num_nodes,1,1x1) weight
        wf=jax.random.normal(ks[2], (N, N, 3), jnp.float32) * 0.1,     # dilation_conv_f weight
        bf=jax.random.normal(ks[3], (N,), jnp.float32) * 0.1,          # dilation_conv_f bias
        wg=jax.random.normal(ks[4], (C, C, 3), jnp.float32) * 0.1,     # dilation_conv_g weight
        bg=jax.random.normal(ks[5], (C,), jnp.float32) * 0.1,          # dilation_conv_g bias
        U=jax.random.uniform(ks[6], (N, C), jnp.float32, -0.5, 0.5),   # xavier-like
        b=jnp.zeros((T, T), jnp.float32),
        v=jax.random.uniform(ks[7], (T, T), jnp.float32, -0.3, 0.3),   # xavier-like
    )
    seq = jax.random.normal(ks[8], (B, C, N, T), jnp.float32)

    out = jax.block_until_ready(tatt_forward(seq, params))
    ref = tatt_reference(seq, params)
    assert out.shape == (B, T, T)
    np.testing.assert_allclose(np.asarray(out), np.asarray(ref), atol=5e-3, rtol=5e-3)
    print("KERNEL_OK")
</pallas_src>

<mosaic_0001>
module attributes {stable_mosaic.version = 11 : i64} {
  func.func @kernel(%arg0: i32, %arg1: memref<16x24x128xf32, #tpu.memory_space<vmem>>, %arg2: memref<440x128xf32, #tpu.memory_space<vmem>>, %arg3: memref<1x24x384xf32, #tpu.memory_space<vmem>>) attributes {dimension_semantics = [#tpu.dimension_semantics<parallel>], iteration_bounds = array<i64: 1>, scalar_prefetch = 0 : i64, scratch_operands = 0 : i64, tpu.core_type = #tpu.core_type<tc>, window_params = [{transform_indices = @transform_0, window_bounds = array<i64: 16, 24, 128>}, {pipeline_mode = #tpu.pipeline_mode<synchronous>, transform_indices = @transform_1, window_bounds = array<i64: 440, 128>}, {transform_indices = @transform_2, window_bounds = array<i64: 1, 24, 384>}]} {
    %c0 = arith.constant 0 : index
    %c0_0 = arith.constant 0 : index
    %c0_1 = arith.constant 0 : index
    %0 = vector.load %arg1[%c0, %c0_0, %c0_1] : memref<16x24x128xf32, #tpu.memory_space<vmem>>, vector<16x24x128xf32>
    %1 = vector.shape_cast %0 : vector<16x24x128xf32> to vector<384x128xf32>
    %2 = tpu.iota {dimensions = array<i32: 1>} : vector<16x24x128xi32>
    %3 = vector.shape_cast %2 : vector<16x24x128xi32> to vector<384x128xi32>
    %c2_i32 = arith.constant 2 : i32
    %4 = vector.broadcast %c2_i32 : i32 to vector<384x128xi32>
    %5 = arith.cmpi sge, %3, %4 : vector<384x128xi32>
    %c2_i32_2 = arith.constant 2 : i32
    %6 = tpu.dynamic_rotate %1 by %c2_i32_2 dim 0 : vector<384x128xf32>, i32 -> vector<384x128xf32>
    %cst = arith.constant 0.000000e+00 : f32
    %7 = vector.broadcast %cst : f32 to vector<384x128xf32>
    %8 = arith.select %5, %6, %7 : vector<384x128xi1>, vector<384x128xf32>
    %c22_i32 = arith.constant 22 : i32
    %9 = vector.broadcast %c22_i32 : i32 to vector<384x128xi32>
    %10 = arith.cmpi slt, %3, %9 : vector<384x128xi32>
    %c382_i32 = arith.constant 382 : i32
    %11 = tpu.dynamic_rotate %1 by %c382_i32 dim 0 : vector<384x128xf32>, i32 -> vector<384x128xf32>
    %cst_3 = arith.constant 0.000000e+00 : f32
    %12 = vector.broadcast %cst_3 : f32 to vector<384x128xf32>
    %13 = arith.select %10, %11, %12 : vector<384x128xi1>, vector<384x128xf32>
    %c0_4 = arith.constant 0 : index
    %c0_5 = arith.constant 0 : index
    %14 = vector.load %arg2[%c0_4, %c0_5] : memref<440x128xf32, #tpu.memory_space<vmem>>, vector<128x32xf32>
    %cst_6 = arith.constant dense<0.000000e+00> : vector<384x32xf32>
    %15 = tpu.matmul %8, %14, %cst_6 {dimension_numbers = #tpu.dot_dimension_numbers<[1], [0], [0], [1], [0, 0, 1, 1], [], []>} : vector<384x128xf32>, vector<128x32xf32>, vector<384x32xf32> -> vector<384x32xf32>
    %c128 = arith.constant 128 : index
    %c0_7 = arith.constant 0 : index
    %16 = vector.load %arg2[%c128, %c0_7] : memref<440x128xf32, #tpu.memory_space<vmem>>, vector<128x32xf32>
    %cst_8 = arith.constant dense<0.000000e+00> : vector<384x32xf32>
    %17 = tpu.matmul %1, %16, %cst_8 {dimension_numbers = #tpu.dot_dimension_numbers<[1], [0], [0], [1], [0, 0, 1, 1], [], []>} : vector<384x128xf32>, vector<128x32xf32>, vector<384x32xf32> -> vector<384x32xf32>
    %18 = arith.addf %15, %17 : vector<384x32xf32>
    %c256 = arith.constant 256 : index
    %c0_9 = arith.constant 0 : index
    %19 = vector.load %arg2[%c256, %c0_9] : memref<440x128xf32, #tpu.memory_space<vmem>>, vector<128x32xf32>
    %cst_10 = arith.constant dense<0.000000e+00> : vector<384x32xf32>
    %20 = tpu.matmul %13, %19, %cst_10 {dimension_numbers = #tpu.dot_dimension_numbers<[1], [0], [0], [1], [0, 0, 1, 1], [], []>} : vector<384x128xf32>, vector<128x32xf32>, vector<384x32xf32> -> vector<384x32xf32>
    %21 = arith.addf %18, %20 : vector<384x32xf32>
    %c384 = arith.constant 384 : index
    %c0_11 = arith.constant 0 : index
    %22 = vector.load %arg2[%c384, %c0_11] : memref<440x128xf32, #tpu.memory_space<vmem>>, vector<1x32xf32>
    %23 = vector.broadcast %22 : vector<1x32xf32> to vector<384x32xf32>
    %24 = arith.addf %21, %23 : vector<384x32xf32>
    %25 = vector.extract_strided_slice %24 {offsets = [0, 0], sizes = [384, 16], strides = [1, 1]} : vector<384x32xf32> to vector<384x16xf32>
    %26 = vector.shape_cast %25 : vector<384x16xf32> to vector<16x24x16xf32>
    %27 = vector.extract_strided_slice %24 {offsets = [0, 16], sizes = [384, 16], strides = [1, 1]} : vector<384x32xf32> to vector<384x16xf32>
    %28 = vector.shape_cast %27 : vector<384x16xf32> to vector<16x24x16xf32>
    "tpu.trace_start"() <{level = 10 : i32, message = "bsn,btn->bst"}> : () -> ()
    %cst_12 = arith.constant dense<0.000000e+00> : vector<16x24x24xf32>
    %29 = tpu.matmul %28, %26, %cst_12 {dimension_numbers = #tpu.dot_dimension_numbers<[2], [2], [1], [1], [0, 0, 0, 1, 1, 1], [0], [0]>} : vector<16x24x16xf32>, vector<16x24x16xf32>, vector<16x24x24xf32> -> vector<16x24x24xf32>
    "tpu.trace_stop"() : () -> ()
    %c392 = arith.constant 392 : index
    %c0_13 = arith.constant 0 : index
    %30 = vector.load %arg2[%c392, %c0_13] : memref<440x128xf32, #tpu.memory_space<vmem>>, vector<24x24xf32>
    %31 = vector.shape_cast %30 : vector<24x24xf32> to vector<1x24x24xf32>
    %32 = vector.broadcast %31 : vector<1x24x24xf32> to vector<16x24x24xf32>
    %33 = arith.addf %29, %32 : vector<16x24x24xf32>
    %cst_14 = arith.constant 0.000000e+00 : f32
    %34 = vector.broadcast %cst_14 : f32 to vector<16x24x24xf32>
    %35 = arith.subf %34, %33 : vector<16x24x24xf32>
    %36 = math.exp %35 : vector<16x24x24xf32>
    %cst_15 = arith.constant 1.000000e+00 : f32
    %37 = vector.broadcast %cst_15 : f32 to vector<16x24x24xf32>
    %38 = arith.addf %37, %36 : vector<16x24x24xf32>
    %39 = tpu.reciprocal %38 {approx = true} : vector<16x24x24xf32> -> vector<16x24x24xf32>
    %c416 = arith.constant 416 : index
    %c0_16 = arith.constant 0 : index
    %40 = vector.load %arg2[%c416, %c0_16] : memref<440x128xf32, #tpu.memory_space<vmem>>, vector<24x24xf32>
    %41 = vector.shape_cast %39 : vector<16x24x24xf32> to vector<384x24xf32>
    %cst_17 = arith.constant dense<0.000000e+00> : vector<24x384xf32>
    %42 = tpu.matmul %40, %41, %cst_17 {dimension_numbers = #tpu.dot_dimension_numbers<[1], [1], [0], [0], [0, 0, 1, 0], [], []>} : vector<24x24xf32>, vector<384x24xf32>, vector<24x384xf32> -> vector<24x384xf32>
    %c0_18 = arith.constant 0 : index
    %c0_19 = arith.constant 0 : index
    %c0_20 = arith.constant 0 : index
    %43 = vector.load %arg3[%c0_18, %c0_19, %c0_20] : memref<1x24x384xf32, #tpu.memory_space<vmem>>, vector<1x24x384xf32>
    %44 = vector.shape_cast %43 : vector<1x24x384xf32> to vector<24x384xf32>
    %45 = vector.shape_cast %42 : vector<24x384xf32> to vector<1x24x384xf32>
    tpu.vector_store %arg3[%c0_18, %c0_19, %c0_20], %45 {strides = array<i32>} : memref<1x24x384xf32, #tpu.memory_space<vmem>>, vector<1x24x384xf32>,
    return
  }
  func.func @transform_0(%arg0: i32) -> (i32, i32, i32) {
    %c0_i32 = arith.constant 0 : i32
    %c0_i32_0 = arith.constant 0 : i32
    %c0_i32_1 = arith.constant 0 : i32
    return %arg0, %c0_i32, %c0_i32_0 : i32, i32, i32
  }
  func.func @transform_1(%arg0: i32) -> (i32, i32) {
    %c0_i32 = arith.constant 0 : i32
    %c0_i32_0 = arith.constant 0 : i32
    %c0_i32_1 = arith.constant 0 : i32
    return %c0_i32, %c0_i32_0 : i32, i32
  }
  func.func @transform_2(%arg0: i32) -> (i32, i32, i32) {
    %c0_i32 = arith.constant 0 : i32
    %c0_i32_0 = arith.constant 0 : i32
    %c0_i32_1 = arith.constant 0 : i32
    return %arg0, %c0_i32, %c0_i32_0 : i32, i32, i32
  }
}

</mosaic_0001>

<bundles_post_ra>
// kernel: tatt_forward.1
= control target key start
LH: loop header
LB: loop body
LE: loop exit
PB: predicated region body
PF: predicated region fallthrough
CT: control target
= control target key end

     0   :  { %v59_v12 = vlaneseq  ;;  %vm5286_vm4 = vmmov 0   ;;  %vm1435_vm5 = vcmask 130048   ;;  %s5288_s6 = smov 112   ;;  %vm3286_vm7 = vcmask 195584   ;;  %s7140_s1 = inlined_call_operand.vmem [shape: f32[440,128], index: 1, kind: input, shape index: {}]   ;;  %s7141_s0 = inlined_call_operand.vmem [shape: f32[16,24,128], index: 0, kind: input, shape index: {}]   ;;  %s7142_s2 = inlined_call_operand.vmem [shape: f32[1,24,384], index: 2, kind: output, shape index: {}]  }
   0x1   :  { %v375_v0 = vld [vmem:[%s7140_s1 + $0x80] sm:$0xff]  ;;  %v376_v1 = vld [vmem:[%s7140_s1 + $0x88] sm:$0xff]  ;;  %v377_v2 = vld [vmem:[%s7140_s1 + $0x90] sm:$0xff] }
   0x2   :  { %v4737_v3 = vpack.c.bf16 %v376_v1, %v375_v0  ;;  %v378_v4 = vld [vmem:[%s7140_s1 + $0x98] sm:$0xff]  ;;  %v379_v6 = vld [vmem:[%s7140_s1 + $0xa0] sm:$0xff]  ;;  %v380_v7 = vld [vmem:[%s7140_s1 + $0xa8] sm:$0xff]  ;;  %v5340_v16 = vshrl.u32 %v59_v12, 7 }
   0x3   :  { %v4741_v5 = vpack.c.bf16 %v378_v4, %v377_v2  ;;  %v4745_v8 = vpack.c.bf16 %v380_v7, %v379_v6  ;;  %v5325_v9 = vld [vmem:[%s7141_s0] sm:$0xff]  ;;  %v381_v10 = vld [vmem:[%s7140_s1 + $0xb0] sm:$0xff]  ;;  %v382_v11 = vld [vmem:[%s7140_s1 + $0xb8] sm:$0xff] }
   0x4   :  { %4738 = vmatprep.subr.bf16.mxu0 %v4737_v3  ;;  %4977 = vmatprep.subr.bf16.mxu1 %v4737_v3  ;;  %v4749_v13 = vpack.c.bf16 %v382_v11, %v381_v10  ;;  %v383_v14 = vld [vmem:[%s7140_s1 + $0xc0] sm:$0xff]  ;;  %v384_v15 = vld [vmem:[%s7140_s1 + $0xc8] sm:$0xff]  ;;  %v7143_v19 = vrot.slane %v5325_v9, 6  ;;  %v385_v21 = vld [vmem:[%s7140_s1 + $0xd0] sm:$0xff]  ;;  %vm114_vm0 = vcmp.lt.s32.totalorder %v5340_v16, 2  ;;  %vm262_vm1 = vcmp.lt.s32.totalorder %v5340_v16, 6 }
   0x5   :  { %4740 = vmatpush3.bf16.msra.mxu0 %v4737_v3  ;;  %4985 = vmatpush3.bf16.msra.mxu1 %v4737_v3  ;;  %v5345_v17 = vld [vmem:[%s7141_s0 + $0x8] sm:$0xff]  ;;  %v4753_v18 = vpack.c.bf16 %v384_v15, %v383_v14  ;;  %v386_v22 = vld [vmem:[%s7140_s1 + $0xd8] sm:$0xff]  ;;  %v5359_v23 = vld [vmem:[%s7141_s0 + $0x10] sm:$0xff]  ;;  %vm63_vm2 = vcmp.ge.s32.totalorder %v5340_v16, 2 }
   0x6   :  { %4742 = vmatprep.subr.bf16.mxu0 %v4741_v5  ;;  %4978 = vmatprep.subr.bf16.mxu1 %v4741_v5  ;;  %v67_v20 = vrot.slane %v5345_v17, 6  ;;  %v68_v24 = vrot.slane %v5359_v23, 6  ;;  %v4757_v25 = vpack.c.bf16 %v386_v22, %v385_v21  ;;  %v5365_v26 = vld [vmem:[%s7141_s0 + $0x18] sm:$0xff]  ;;  %v387_v28 = vld [vmem:[%s7140_s1 + $0xe0] sm:$0xff]  ;;  %v388_v29 = vld [vmem:[%s7140_s1 + $0xe8] sm:$0xff] }
   0x7   :  { %4176 = vmatprep.mubr.f32.mxu0 %v5325_v9  ;;  %v69_v30 = vrot.slane %v5365_v26, 6  ;;  %v389_v31 = vld [vmem:[%s7140_s1 + $0xf0] sm:$0xff]  ;;  %v5386_v32 = vld [vmem:[%s7141_s0 + $0x20] sm:$0xff]  ;;  %v390_v33 = vld [vmem:[%s7140_s1 + $0xf8] sm:$0xff]  ;;  %v4761_v38 = vpack.c.bf16 %v388_v29, %v387_v28 }
   0x8   :  { %v5371_v27 = vsel %vm114_vm0, %v7143_v19, %v67_v20  ;;  %v70_v34 = vrot.slane %v5386_v32, 6  ;;  %v5395_v35 = vld [vmem:[%s7141_s0 + $0x28] sm:$0xff]  ;;  %v5400_v36 = vld [vmem:[%s7141_s0 + $0x30] sm:$0xff]  ;;  %v5404_v37 = vsel %vm114_vm0, %v67_v20, %v68_v24  ;;  %v5410_v40 = vld [vmem:[%s7141_s0 + $0x38] sm:$0xff]  ;;  %v5443_v49 = vpack.c.bf16 %v390_v33, %v389_v31 }
   0x9   :  { %4744 = vmatpush3.bf16.msra.mxu0 %v4741_v5  ;;  %4986 = vmatpush3.bf16.msra.mxu1 %v4741_v5  ;;  %v71_v39 = vrot.slane %v5395_v35, 6  ;;  %v5415_v41 = vld [vmem:[%s7141_s0 + $0x40] sm:$0xff]  ;;  %v5420_v42 = vld [vmem:[%s7141_s0 + $0x48] sm:$0xff]  ;;  %v72_v43 = vrot.slane %v5400_v36, 6  ;;  %v73_v44 = vrot.slane %v5410_v40, 6  ;;  %v5427_v45 = vld [vmem:[%s7141_s0 + $0x50] sm:$0xff]  ;;  %v5441_v48 = vsel %vm114_vm0, %v68_v24, %v69_v30 }
   0xa   :  { %4746 = vmatprep.subr.bf16.mxu0 %v4745_v8  ;;  %4979 = vmatprep.subr.bf16.mxu1 %v4745_v8  ;;  %v5432_v46 = vld [vmem:[%s7141_s0 + $0x58] sm:$0xff]  ;;  %v5437_v47 = vld [vmem:[%s7141_s0 + $0x60] sm:$0xff]  ;;  %v74_v50 = vrot.slane %v5415_v41, 6  ;;  %v75_v51 = vrot.slane %v5420_v42, 6  ;;  %v76_v52 = vrot.slane %v5427_v45, 6  ;;  %v5451_v53 = vld [vmem:[%s7141_s0 + $0x68] sm:$0xff]  ;;  %v5479_v62 = vsel %vm114_vm0, %v69_v30, %v70_v34 }
   0xb   :  { %v359_v54 = vld [vmem:[%s7140_s1] sm:$0xff]  ;;  %v360_v55 = vld [vmem:[%s7140_s1 + $0x8] sm:$0xff]  ;;  %v77_v56 = vrot.slane %v5432_v46, 6  ;;  %v78_v57 = vrot.slane %v5437_v47, 6  ;;  %v79_v58 = vrot.slane %v5451_v53, 6  ;;  %v5465_v59 = vld [vmem:[%s7141_s0 + $0x70] sm:$0xff]  ;;  %v5501_v5 = vsel %vm114_vm0, %v70_v34, %v71_v39 }
   0xc   :  { %v5470_v60 = vld [vmem:[%s7141_s0 + $0x78] sm:$0xff]  ;;  %v5475_v61 = vld [vmem:[%s7141_s0 + $0x80] sm:$0xff]  ;;  %v80_v63 = vrot.slane %v5465_v59, 6  ;;  %v5487_v2 = vld [vmem:[%s7141_s0 + $0x88] sm:$0xff]  ;;  %v4769_v7 = vpack.c.bf16 %v360_v55, %v359_v54  ;;  %v5541_v24 = vsel %vm114_vm0, %v71_v39, %v72_v43  ;;  %v5553_v31 = vsel %vm114_vm0, %v72_v43, %v73_v44 }
   0xd   :  { %4748 = vmatpush3.bf16.msra.mxu0 %v4745_v8  ;;  %4987 = vmatpush3.bf16.msra.mxu1 %v4745_v8  ;;  %v81_v0 = vrot.slane %v5470_v60, 6  ;;  %v82_v1 = vrot.slane %v5475_v61, 6  ;;  %v5492_v3 = vld [vmem:[%s7141_s0 + $0x90] sm:$0xff]  ;;  %v5497_v4 = vld [vmem:[%s7141_s0 + $0x98] sm:$0xff]  ;;  %v83_v6 = vrot.slane %v5487_v2, 6  ;;  %v5509_v11 = vld [vmem:[%s7141_s0 + $0xa0] sm:$0xff]  ;;  %v5559_v34 = vsel %vm114_vm0, %v73_v44, %v74_v50 }
   0xe   :  { %4750 = vmatprep.subr.bf16.mxu0 %v4749_v13  ;;  %4980 = vmatprep.subr.bf16.mxu1 %v4749_v13  ;;  %v84_v8 = vrot.slane %v5492_v3, 6  ;;  %v85_v10 = vrot.slane %v5497_v4, 6  ;;  %v5514_v12 = vld [vmem:[%s7141_s0 + $0xa8] sm:$0xff]  ;;  %v86_v14 = vrot.slane %v5509_v11, 6  ;;  %v5527_v20 = vld [vmem:[%s7141_s0 + $0xb8] sm:$0xff]  ;;  %v5532_v21 = vld [vmem:[%s7141_s0 + $0xc0] sm:$0xff]  ;;  %v5563_v39 = vsel %vm114_vm0, %v74_v50, %v75_v51 }
   0xf   :  { %v87_v15 = vrot.slane %v5514_v12, 6  ;;  %v5537_v22 = vld [vmem:[%s7141_s0 + $0xc8] sm:$0xff]  ;;  %v90_v28 = vrot.slane %v5532_v21, 6  ;;  %v5549_v30 = vld [vmem:[%s7141_s0 + $0xd0] sm:$0xff]  ;;  %v5567_v54 = vsel %vm114_vm0, %v75_v51, %v76_v52  ;;  %v362_v43 = vld [vmem:[%s7140_s1 + $0x18] sm:$0xff]  ;;  %v5578_v44 = vsel %vm114_vm0, %v76_v52, %v77_v56 }
  0x10   :  { %v91_v29 = vrot.slane %v5537_v22, 6  ;;  %v5582_v50 = vsel %vm114_vm0, %v77_v56, %v78_v57  ;;  %v5586_v51 = vsel %vm114_vm0, %v78_v57, %v79_v58  ;;  %v5590_v55 = vsel %vm114_vm0, %v79_v58, %v80_v63  ;;  %vm6326_vm6 = vmpackc.low %vm1435_vm5, %vm1435_vm5 }
  0x11   :  { %4752 = vmatpush3.bf16.msra.mxu0 %v4749_v13  ;;  %4988 = vmatpush3.bf16.msra.mxu1 %v4749_v13  ;;  %v5519_v13 = vld [vmem:[%s7141_s0 + $0xb0] sm:$0xff]  ;;  %v5594_v19 = vsel %vm114_vm0, %v80_v63, %v81_v0  ;;  %v5598_v52 = vsel %vm114_vm0, %v81_v0, %v82_v1  ;;  %v5602_v56 = vsel %vm114_vm0, %v82_v1, %v83_v6  ;;  %vm6977_vm8 = vmpackc.low %vm3286_vm7, %vm3286_vm7 }
  0x12   :  { %4754 = vmatprep.subr.bf16.mxu0 %v4753_v18  ;;  %4981 = vmatprep.subr.bf16.mxu1 %v4753_v18  ;;  %v5607_v57 = vsel %vm114_vm0, %v83_v6, %v84_v8  ;;  %v5611_v58 = vsel %vm114_vm0, %v84_v8, %v85_v10  ;;  %v5615_v63 = vsel %vm114_vm0, %v85_v10, %v86_v14  ;;  %v363_v8 = vld [vmem:[%s7140_s1 + $0x20] sm:$0xff]  ;;  %v364_v10 = vld [vmem:[%s7140_s1 + $0x28] sm:$0xff] }
  0x13   :  { %v5619_v1 = vsel %vm114_vm0, %v86_v14, %v87_v15 }
  0x15   :  { %4756 = vmatpush3.bf16.msra.mxu0 %v4753_v18  ;;  %4989 = vmatpush3.bf16.msra.mxu1 %v4753_v18  ;;  %v88_v18 = vrot.slane %v5519_v13, 6 }
  0x16   :  { %4758 = vmatprep.subr.bf16.mxu0 %v4757_v25  ;;  %4982 = vmatprep.subr.bf16.mxu1 %v4757_v25 }
  0x17   :  { %v5623_v33 = vsel %vm114_vm0, %v87_v15, %v88_v18  ;;  %v5641_v15 = vsel %vm114_vm0, %v90_v28, %v91_v29 }
  0x19   :  { %4760 = vmatpush3.bf16.msra.mxu0 %v4757_v25  ;;  %4990 = vmatpush3.bf16.msra.mxu1 %v4757_v25  ;;  %v89_v25 = vrot.slane %v5527_v20, 6 }
  0x1a   :  { %4762 = vmatprep.subr.bf16.mxu0 %v4761_v38  ;;  %4983 = vmatprep.subr.bf16.mxu1 %v4761_v38 }
  0x1b   :  { %v5627_v6 = vsel %vm114_vm0, %v88_v18, %v89_v25  ;;  %v5637_v14 = vsel %vm114_vm0, %v89_v25, %v90_v28  ;;  %v4777_v25 = vpack.c.bf16 %v364_v10, %v363_v8  ;;  %v365_v28 = vld [vmem:[%s7140_s1 + $0x30] sm:$0xff]  ;;  %v370_v10 = vld [vmem:[%s7140_s1 + $0x58] sm:$0xff] }
  0x1d   :  { %4764 = vmatpush3.bf16.msra.mxu0 %v4761_v38  ;;  %4991 = vmatpush3.bf16.msra.mxu1 %v4761_v38  ;;  %v361_v38 = vld [vmem:[%s7140_s1 + $0x10] sm:$0xff] }
  0x1e   :  { %4766 = vmatprep.subr.bf16.mxu0 %v5443_v49  ;;  %4984 = vmatprep.subr.bf16.mxu1 %v5443_v49  ;;  %v4773_v0 = vpack.c.bf16 %v362_v43, %v361_v38  ;;  %v7166_v38 = vrot.slane %v5549_v30, 6  ;;  %v366_v43 = vld [vmem:[%s7140_s1 + $0x38] sm:$0xff] }
  0x20   :  { %v5647_v18 = vsel %vm114_vm0, %v91_v29, %v7166_v38  ;;  %v368_v29 = vld [vmem:[%s7140_s1 + $0x48] sm:$0xff] }
  0x21   :  { %4768 = vmatpush3.bf16.msra.mxu0 %v5443_v49  ;;  %4992 = vmatpush3.bf16.msra.mxu1 %v5443_v49  ;;  %v4781_v49 = vpack.c.bf16 %v366_v43, %v365_v28  ;;  %v372_v28 = vld [vmem:[%s7140_s1 + $0x68] sm:$0xff] }
  0x22   :  { %4770 = vmatprep.subr.bf16.mxu0 %v4769_v7 }
  0x24   :  { %4177 = vmatmul.mubr.f32.vlgmr.msra.gmra.mrb[0].mxu0 %v5345_v17 }
  0x25   :  { %4179 = vmatprep.mubr.f32.mxu0 %v5359_v23  ;;  %4772 = vmatpush3.bf16.msra.mxu0 %v4769_v7  ;;  %v367_v7 = vld [vmem:[%s7140_s1 + $0x40] sm:$0xff] }
  0x26   :  { %4774 = vmatprep.subr.bf16.mxu0 %v4773_v0  ;;  %v4785_v8 = vpack.c.bf16 %v368_v29, %v367_v7  ;;  %v374_v7 = vld [vmem:[%s7140_s1 + $0x78] sm:$0xff]  ;;  %v5693_v29 = vld [vmem:[%s7141_s0 + $0x130] sm:$0xff] }
  0x27   :  { %7167 = vst [vmem:[#allocation2_spill] sm:$0xff] %v5693_v29  ;;  %4233 = vmatprep.mubr.f32.mxu1 %v5693_v29 }
  0x28   :  { %4180 = vmatmul.mubr.f32.gmra.mrb[2].mxu0 %v5365_v26 }
  0x29   :  { %4182 = vmatprep.mubr.f32.mxu0 %v5386_v32  ;;  %4776 = vmatpush3.bf16.msra.mxu0 %v4773_v0  ;;  %v369_v0 = vld [vmem:[%s7140_s1 + $0x50] sm:$0xff] }
  0x2a   :  { %4778 = vmatprep.subr.bf16.mxu0 %v4777_v25  ;;  %v4789_v38 = vpack.c.bf16 %v370_v10, %v369_v0  ;;  %v1001_v10 = vld [vmem:[%s7140_s1 + $0x100] sm:$0xff] }
  0x2c   :  { %4183 = vmatmul.mubr.f32.gmra.mrb[4].mxu0 %v5395_v35 }
  0x2d   :  { %4185 = vmatprep.mubr.f32.mxu0 %v5400_v36  ;;  %4780 = vmatpush3.bf16.msra.mxu0 %v4777_v25  ;;  %v371_v25 = vld [vmem:[%s7140_s1 + $0x60] sm:$0xff] }
  0x2e   :  { %4782 = vmatprep.subr.bf16.mxu0 %v4781_v49  ;;  %v4793_v43 = vpack.c.bf16 %v372_v28, %v371_v25  ;;  %v1002_v25 = vld [vmem:[%s7140_s1 + $0x108] sm:$0xff] }
  0x2f   :  { %v5721_v28 = vld [vmem:[%s7141_s0 + $0x148] sm:$0xff] }
  0x30   :  { %4186 = vmatmul.mubr.f32.gmra.mrb[6].mxu0 %v5410_v40  ;;  %7170 = vst [vmem:[#allocation5_spill] sm:$0xff] %v5721_v28 }
  0x31   :  { %4188 = vmatprep.mubr.f32.mxu0 %v5415_v41  ;;  %4784 = vmatpush3.bf16.msra.mxu0 %v4781_v49  ;;  %v373_v49 = vld [vmem:[%s7140_s1 + $0x70] sm:$0xff] }
  0x32   :  { %4786 = vmatprep.subr.bf16.mxu0 %v4785_v8  ;;  %v4797_v0 = vpack.c.bf16 %v374_v7, %v373_v49  ;;  %v5723_v49 = vpack.c.bf16 %v1002_v25, %v1001_v10  ;;  %v5729_v7 = vld [vmem:[%s7141_s0 + $0x150] sm:$0xff]  ;;  %v5744_v10 = vld [vmem:[%s7141_s0 + $0x160] sm:$0xff]  ;;  %v5757_v25 = vld [vmem:[%s7141_s0 + $0x168] sm:$0xff] }
  0x33   :  { %7171 = vst [vmem:[#allocation6_spill] sm:$0xff] %v5729_v7  ;;  %7173 = vst [vmem:[#allocation8_spill] sm:$0xff] %v5744_v10 }
  0x34   :  { %4189 = vmatmul.mubr.f32.gmra.mrb[8].mxu0 %v5420_v42  ;;  %7175 = vst [vmem:[#allocation10_spill] sm:$0xff] %v5757_v25 }
  0x35   :  { %4191 = vmatprep.mubr.f32.mxu0 %v5427_v45  ;;  %4788 = vmatpush3.bf16.msra.mxu0 %v4785_v8  ;;  %v5701_v8 = vld [vmem:[%s7141_s0 + $0x138] sm:$0xff] }
  0x36   :  { %4790 = vmatprep.subr.bf16.mxu0 %v4789_v38  ;;  %7168 = vst [vmem:[#allocation3_spill] sm:$0xff] %v5701_v8  ;;  %4234 = vmatmul.mubr.f32.vlgmr.msra.gmra.mrb[0].mxu1 %v5701_v8  ;;  %v217_v8 = vrot.slane %v5365_v26, 2  ;;  %v220_v26 = vrot.slane %v5400_v36, 2  ;;  %v5815_v36 = vld [vmem:[%s7141_s0 + $0xd8] sm:$0xff] }
  0x38   :  { %4192 = vmatmul.mubr.f32.gmra.mrb[10].mxu0 %v5432_v46 }
  0x39   :  { %4194 = vmatprep.mubr.f32.mxu0 %v5437_v47  ;;  %4792 = vmatpush3.bf16.msra.mxu0 %v4789_v38  ;;  %v5713_v38 = vld [vmem:[%s7141_s0 + $0x140] sm:$0xff] }
  0x3a   :  { %4794 = vmatprep.subr.bf16.mxu0 %v4793_v43  ;;  %7169 = vst [vmem:[#allocation4_spill] sm:$0xff] %v5713_v38  ;;  %4236 = vmatprep.mubr.f32.mxu1 %v5713_v38  ;;  %v216_v38 = vrot.slane %v5359_v23, 2  ;;  %v218_v23 = vrot.slane %v5386_v32, 2 }
  0x3b   :  { %4237 = vmatmul.mubr.f32.gmra.mrb[2].mxu1 %v5721_v28  ;;  %v7164_v28 = vrot.slane %v5345_v17, 2 }
  0x3c   :  { %4195 = vmatmul.mubr.f32.gmra.mrb[12].mxu0 %v5451_v53  ;;  %4239 = vmatprep.mubr.f32.mxu1 %v5729_v7  ;;  %v5802_v32 = vsel %vm262_vm1, %v217_v8, %v218_v23 }
  0x3d   :  { %4197 = vmatprep.mubr.f32.mxu0 %v5465_v59  ;;  %4796 = vmatpush3.bf16.msra.mxu0 %v4793_v43  ;;  %v5737_v43 = vld [vmem:[%s7141_s0 + $0x158] sm:$0xff]  ;;  %v5790_v29 = vsel %vm262_vm1, %v7164_v28, %v216_v38  ;;  %7177 = vst [vmem:[#allocation12_spill] sm:$0xff] %v5802_v32  ;;  %v222_v28 = vrot.slane %v5415_v41, 2  ;;  %v1006_v32 = vld [vmem:[%s7140_s1 + $0x128] sm:$0xff] }
  0x3e   :  { %4798 = vmatprep.subr.bf16.mxu0 %v4797_v0  ;;  %7172 = vst [vmem:[#allocation7_spill] sm:$0xff] %v5737_v43 }
  0x3f   :  { %4240 = vmatmul.mubr.f32.gmra.mrb[4].mxu1 %v5737_v43  ;;  %v5763_v43 = vld [vmem:[%s7141_s0 + $0x170] sm:$0xff] }
  0x40   :  { %4198 = vmatmul.mubr.f32.gmra.mrb[14].mxu0 %v5470_v60  ;;  %4242 = vmatprep.mubr.f32.mxu1 %v5744_v10  ;;  %7176 = vst [vmem:[#allocation11_spill] sm:$0xff] %v5763_v43  ;;  %v7162_v7 = vrot.slane %v5763_v43, 6 }
  0x41   :  { %4200 = vmatprep.mubr.f32.mxu0 %v5475_v61  ;;  %4800 = vmatpush3.bf16.msra.mxu0 %v4797_v0  ;;  %v5752_v0 = vld [vmem:[%s7141_s0 + $0x178] sm:$0xff] }
  0x42   :  { %4802 = vmatprep.subr.bf16.mxu0 %v5723_v49  ;;  %7174 = vst [vmem:[#allocation9_spill] sm:$0xff] %v5752_v0  ;;  %v7163_v10 = vrot.slane %v5752_v0, 6 }
  0x43   :  { %4243 = vmatmul.mubr.f32.gmra.mrb[6].mxu1 %v5757_v25 }
  0x44   :  { %4201 = vmatmul.mubr.f32.gmra.mrb[16].mxu0 %v5487_v2  ;;  %4245 = vmatprep.mubr.f32.mxu1 %v5763_v43  ;;  %v5779_v25 = vsel %vm114_vm0, %v7162_v7, %v7163_v10  ;;  %v219_v43 = vrot.slane %v5395_v35, 2  ;;  %v5796_v7 = vsel %vm262_vm1, %v216_v38, %v217_v8  ;;  %v221_v10 = vrot.slane %v5410_v40, 2  ;;  %v5824_v40 = vld [vmem:[%s7141_s0 + $0xe0] sm:$0xff] }
  0x45   :  { %4203 = vmatprep.mubr.f32.mxu0 %v5492_v3  ;;  %v223_v38 = vrot.slane %v5420_v42, 2  ;;  %v5846_v42 = vld [vmem:[%s7141_s0 + $0xf0] sm:$0xff] }
  0x46   :  { %v5808_v35 = vsel %vm262_vm1, %v218_v23, %v219_v43  ;;  %v5819_v8 = vsel %vm262_vm1, %v219_v43, %v220_v26  ;;  %v5830_v41 = vsel %vm262_vm1, %v220_v26, %v221_v10  ;;  %v224_v23 = vrot.slane %v5427_v45, 2  ;;  %v5837_v43 = vld [vmem:[%s7141_s0 + $0xe8] sm:$0xff] }
  0x47   :  { %4246 = vmatmul.mubr.f32.gmra.mrb[8].mxu1 %v5752_v0  ;;  %7178 = vst [vmem:[#allocation13_spill] sm:$0xff] %v5808_v35  ;;  %7179 = vst [vmem:[#allocation14_spill] sm:$0xff] %v5819_v8  ;;  %v5841_v8 = vsel %vm262_vm1, %v221_v10, %v222_v28  ;;  %v225_v26 = vrot.slane %v5432_v46, 2  ;;  %v5852_v45 = vsel %vm262_vm1, %v222_v28, %v223_v38  ;;  %v5859_v10 = vld [vmem:[%s7141_s0 + $0xf8] sm:$0xff]  ;;  %v5868_v46 = vld [vmem:[%s7141_s0 + $0x100] sm:$0xff]  ;;  %v227_v28 = vrot.slane %v5451_v53, 2 }
  0x48   :  { %4204 = vmatmul.mubr.f32.gmra.mrb[18].mxu0 %v5497_v4  ;;  %7180 = vst [vmem:[#allocation15_spill] sm:$0xff] %v5830_v41  ;;  %7181 = vst [vmem:[#allocation16_spill] sm:$0xff] %v5841_v8  ;;  %v226_v41 = vrot.slane %v5437_v47, 2  ;;  %v5863_v8 = vsel %vm262_vm1, %v223_v38, %v224_v23  ;;  %v5881_v38 = vld [vmem:[%s7141_s0 + $0x108] sm:$0xff]  ;;  %v5890_v53 = vld [vmem:[%s7141_s0 + $0x110] sm:$0xff] }
  0x49   :  { %4206 = vmatprep.mubr.f32.mxu0 %v5509_v11  ;;  %7182 = vst [vmem:[#allocation17_spill] sm:$0xff] %v5852_v45  ;;  %7183 = vst [vmem:[#allocation18_spill] sm:$0xff] %v5863_v8  ;;  %v5874_v47 = vsel %vm262_vm1, %v224_v23, %v225_v26  ;;  %v228_v45 = vrot.slane %v5465_v59, 2  ;;  %v229_v23 = vrot.slane %v5470_v60, 2  ;;  %v5912_v60 = vld [vmem:[%s7141_s0 + $0x120] sm:$0xff]  ;;  %v1004_v35 = vld [vmem:[%s7140_s1 + $0x118] sm:$0xff] }
  0x4a   :  { %7184 = vst [vmem:[#allocation19_spill] sm:$0xff] %v5874_v47  ;;  %v5885_v8 = vsel %vm262_vm1, %v225_v26, %v226_v41  ;;  %v5896_v59 = vsel %vm262_vm1, %v226_v41, %v227_v28  ;;  %v230_v47 = vrot.slane %v5475_v61, 2  ;;  %v5903_v26 = vld [vmem:[%s7141_s0 + $0x118] sm:$0xff]  ;;  %v231_v41 = vrot.slane %v5487_v2, 2 }
  0x4b   :  { %7185 = vst [vmem:[#allocation20_spill] sm:$0xff] %v5885_v8  ;;  %7186 = vst [vmem:[#allocation21_spill] sm:$0xff] %v5896_v59  ;;  %v5907_v8 = vsel %vm262_vm1, %v227_v28, %v228_v45  ;;  %v5918_v61 = vsel %vm262_vm1, %v228_v45, %v229_v23  ;;  %v232_v59 = vrot.slane %v5492_v3, 2  ;;  %v5925_v28 = vld [vmem:[%s7141_s0 + $0x128] sm:$0xff]  ;;  %v7190_v2 = vrot.slane %v5325_v9, 6 }
  0x4c   :  { %4207 = vmatmul.mubr.f32.gmra.mrb[20].mxu0 %v5514_v12  ;;  %7187 = vst [vmem:[#allocation22_spill] sm:$0xff] %v5907_v8  ;;  %7188 = vst [vmem:[#allocation23_spill] sm:$0xff] %v5918_v61  ;;  %v5929_v8 = vsel %vm262_vm1, %v229_v23, %v230_v47  ;;  %v7191_v45 = vrot.slane %v5752_v0, 6  ;;  %v1003_v61 = vld [vmem:[%s7140_s1 + $0x110] sm:$0xff]  ;;  %v233_v23 = vrot.slane %v5497_v4, 2  ;;  %v234_v0 = vrot.slane %v5509_v11, 2 }
  0x4d   :  { %4209 = vmatprep.mubr.f32.mxu0 %v5519_v13  ;;  %7189 = vst [vmem:[#allocation24_spill] sm:$0xff] %v5929_v8  ;;  %v5948_v8 = vsel %vm262_vm1, %v230_v47, %v231_v41  ;;  %v1005_v4 = vld [vmem:[%s7140_s1 + $0x120] sm:$0xff]  ;;  %v235_v47 = vrot.slane %v5514_v12, 2  ;;  %v1008_v12 = vld [vmem:[%s7140_s1 + $0x138] sm:$0xff] }
  0x4e   :  { %v162_v3 = vsel %vm114_vm0, %v7191_v45, %v7190_v2  ;;  %v5955_v2 = vsel %vm262_vm1, %v231_v41, %v232_v59  ;;  %v4805_v45 = vpack.c.bf16 %v1004_v35, %v1003_v61  ;;  %v5967_v11 = vsel %vm262_vm1, %v232_v59, %v233_v23 }
  0x4f   :  { %v236_v41 = vrot.slane %v5519_v13, 2  ;;  %v5974_v35 = vsel %vm262_vm1, %v233_v23, %v234_v0  ;;  %v4809_v61 = vpack.c.bf16 %v1006_v32, %v1005_v4  ;;  %v237_v13 = vrot.slane %v5527_v20, 2 }
  0x50   :  { %4210 = vmatmul.mubr.f32.gmra.mrb[22].mxu0 %v5527_v20  ;;  %v1009_v20 = vld [vmem:[%s7140_s1 + $0x140] sm:$0xff] }
  0x51   :  { %4212 = vmatprep.mubr.f32.mxu0 %v5532_v21  ;;  %v5994_v32 = vsel %vm262_vm1, %v235_v47, %v236_v41 }
  0x54   :  { %4213 = vmatmul.mubr.f32.gmra.mrb[24].mxu0 %v5537_v22 }
  0x55   :  { %4215 = vmatprep.mubr.f32.mxu0 %v5549_v30 }
  0x58   :  { %4216 = vmatmul.mubr.f32.gmra.mrb[26].mxu0 %v5815_v36 }
  0x59   :  { %4218 = vmatprep.mubr.f32.mxu0 %v5824_v40 }
  0x5c   :  { %4219 = vmatmul.mubr.f32.gmra.mrb[28].mxu0 %v5837_v43 }
  0x5d   :  { %4221 = vmatprep.mubr.f32.mxu0 %v5846_v42 }
  0x60   :  { %4222 = vmatmul.mubr.f32.gmra.mrb[30].mxu0 %v5859_v10 }
  0x61   :  { %4224 = vmatprep.mubr.f32.mxu0 %v5868_v46 }
  0x64   :  { %4225 = vmatmul.mubr.f32.gmra.mrb[32].mxu0 %v5881_v38 }
  0x65   :  { %4227 = vmatprep.mubr.f32.mxu0 %v5890_v53 }
  0x68   :  { %4228 = vmatmul.mubr.f32.gmra.mrb[34].mxu0 %v5903_v26 }
  0x69   :  { %4230 = vmatprep.mubr.f32.mxu0 %v5912_v60 }
  0x6c   :  { %4231 = vmatmul.mubr.f32.gmra.mrb[36].mxu0 %v5925_v28 }
  0x6d   :  { %4280 = vmatprep.mubr.msk.f32.mxu0 %vm63_vm2, %v162_v3 }
  0x70   :  { %4281 = vmatmul.mubr.f32.vlgmr.msra.gmra.mrb[0].mxu0 %v5371_v27  ;;  %v1007_v27 = vld [vmem:[%s7140_s1 + $0x130] sm:$0xff] }
  0x71   :  { %4283 = vmatprep.mubr.f32.mxu0 %v5404_v37  ;;  %4804 = vmatpush3.bf16.msra.mxu0 %v5723_v49  ;;  %v5988_v37 = vsel %vm262_vm1, %v234_v0, %v235_v47  ;;  %v238_v49 = vrot.slane %v5532_v21, 2  ;;  %v4813_v59 = vpack.c.bf16 %v1008_v12, %v1007_v27  ;;  %v239_v0 = vrot.slane %v5537_v22, 2  ;;  %v1012_v22 = vld [vmem:[%s7140_s1 + $0x158] sm:$0xff]  ;;  %v1013_v47 = vld [vmem:[%s7140_s1 + $0x160] sm:$0xff] }
  0x72   :  { %4806 = vmatprep.subr.bf16.mxu0 %v4805_v45  ;;  %v240_v21 = vrot.slane %v5549_v30, 2  ;;  %v102_v27 = vrot.slane %v5912_v60, 6 }
  0x73   :  { %v6014_v3 = vsel %vm262_vm1, %v237_v13, %v238_v49 }
  0x74   :  { %4284 = vmatmul.mubr.msk.f32.gmra.mrb[2].mxu0 %vm63_vm2, %v5441_v48  ;;  %v1010_v48 = vld [vmem:[%s7140_s1 + $0x148] sm:$0xff] }
  0x75   :  { %4286 = vmatprep.mubr.f32.mxu0 %v5479_v62  ;;  %4808 = vmatpush3.bf16.msra.mxu0 %v4805_v45  ;;  %v6006_v62 = vsel %vm262_vm1, %v236_v41, %v237_v13  ;;  %v4817_v23 = vpack.c.bf16 %v1010_v48, %v1009_v20  ;;  %v6032_v45 = vsel %vm262_vm1, %v239_v0, %v240_v21  ;;  %v1015_v41 = vld [vmem:[%s7140_s1 + $0x170] sm:$0xff]  ;;  %v103_v13 = vrot.slane %v5925_v28, 6  ;;  %v7193_v20 = vld [vmem:[#allocation2_spill] sm:$0xff] }
  0x76   :  { %4810 = vmatprep.subr.bf16.mxu0 %v4809_v61  ;;  %v104_v48 = vrot.slane %v7193_v20, 6 }
  0x78   :  { %4287 = vmatmul.mubr.f32.gmra.mrb[4].mxu0 %v5501_v5  ;;  %v1011_v5 = vld [vmem:[%s7140_s1 + $0x150] sm:$0xff] }
  0x79   :  { %4289 = vmatprep.mubr.msk.f32.mxu0 %vm63_vm2, %v5541_v24  ;;  %4812 = vmatpush3.bf16.msra.mxu0 %v4809_v61  ;;  %v6025_v24 = vsel %vm262_vm1, %v238_v49, %v239_v0  ;;  %v4821_v4 = vpack.c.bf16 %v1012_v22, %v1011_v5  ;;  %v1016_v61 = vld [vmem:[%s7140_s1 + $0x178] sm:$0xff]  ;;  %v125_v0 = vsel %vm114_vm0, %v102_v27, %v103_v13 }
  0x7a   :  { %4814 = vmatprep.subr.bf16.mxu0 %v4813_v59  ;;  %v124_v22 = vsel %vm114_vm0, %v103_v13, %v104_v48  ;;  %v7205_v13 = vld [vmem:[#allocation13_spill] sm:$0xff] }
  0x7c   :  { %4290 = vmatmul.mubr.f32.gmra.mrb[6].mxu0 %v5553_v31  ;;  %v1014_v31 = vld [vmem:[%s7140_s1 + $0x168] sm:$0xff] }
  0x7d   :  { %4292 = vmatprep.mubr.f32.mxu0 %v5559_v34  ;;  %4816 = vmatpush3.bf16.msra.mxu0 %v4813_v59  ;;  %v4825_v34 = vpack.c.bf16 %v1014_v31, %v1013_v47 }
  0x7e   :  { %4818 = vmatprep.subr.bf16.mxu0 %v4817_v23 }
  0x80   :  { %4293 = vmatmul.mubr.msk.f32.gmra.mrb[8].mxu0 %vm63_vm2, %v5563_v39  ;;  %v4829_v39 = vpack.c.bf16 %v1016_v61, %v1015_v41 }
  0x81   :  { %4295 = vmatprep.mubr.f32.mxu0 %v5567_v54  ;;  %4820 = vmatpush3.bf16.msra.mxu0 %v4817_v23  ;;  %v94_v54 = vrot.slane %v5824_v40, 6  ;;  %v7194_v23 = vld [vmem:[#allocation3_spill] sm:$0xff] }
  0x82   :  { %4822 = vmatprep.subr.bf16.mxu0 %v4821_v4  ;;  %v105_v5 = vrot.slane %v7194_v23, 6 }
  0x84   :  { %4296 = vmatmul.mubr.f32.gmra.mrb[10].mxu0 %v5578_v44  ;;  %v95_v44 = vrot.slane %v5837_v43, 6  ;;  %v123_v31 = vsel %vm114_vm0, %v104_v48, %v105_v5  ;;  %v7209_v48 = vld [vmem:[#allocation17_spill] sm:$0xff] }
  0x85   :  { %4298 = vmatprep.mubr.msk.f32.mxu0 %vm63_vm2, %v5582_v50  ;;  %4824 = vmatpush3.bf16.msra.mxu0 %v4821_v4  ;;  %v7192_v50 = vrot.slane %v5549_v30, 6  ;;  %v7195_v4 = vld [vmem:[#allocation4_spill] sm:$0xff]  ;;  %v246_v30 = vrot.slane %v5868_v46, 2 }
  0x86   :  { %4826 = vmatprep.subr.bf16.mxu0 %v4825_v34  ;;  %v106_v47 = vrot.slane %v7195_v4, 6 }
  0x88   :  { %4299 = vmatmul.mubr.f32.gmra.mrb[12].mxu0 %v5586_v51  ;;  %v96_v51 = vrot.slane %v5846_v42, 6  ;;  %v122_v61 = vsel %vm114_vm0, %v105_v5, %v106_v47  ;;  %v7213_v5 = vld [vmem:[#allocation21_spill] sm:$0xff] }
  0x89   :  { %4301 = vmatprep.mubr.f32.mxu0 %v5590_v55  ;;  %4828 = vmatpush3.bf16.msra.mxu0 %v4825_v34  ;;  %v7196_v34 = vld [vmem:[#allocation5_spill] sm:$0xff] }
  0x8a   :  { %4830 = vmatprep.subr.bf16.mxu0 %v4829_v39  ;;  %v107_v41 = vrot.slane %v7196_v34, 6 }
  0x8c   :  { %4302 = vmatmul.mubr.msk.f32.gmra.mrb[14].mxu0 %vm63_vm2, %v5594_v19  ;;  %v93_v19 = vrot.slane %v5815_v36, 6 }
  0x8d   :  { %4304 = vmatprep.mubr.f32.mxu0 %v5598_v52  ;;  %4832 = vmatpush3.bf16.msra.mxu0 %v4829_v39  ;;  %v97_v52 = vrot.slane %v5859_v10, 6  ;;  %v7197_v39 = vld [vmem:[#allocation6_spill] sm:$0xff] }
  0x8e   :  { %v134_v55 = vsel %vm114_vm0, %v93_v19, %v94_v54 }
  0x90   :  { %4305 = vmatmul.mubr.f32.gmra.mrb[16].mxu0 %v5602_v56  ;;  %v133_v56 = vsel %vm114_vm0, %v94_v54, %v95_v44  ;;  %v121_v54 = vsel %vm114_vm0, %v106_v47, %v107_v41  ;;  %v7215_v47 = vld [vmem:[#allocation23_spill] sm:$0xff] }
  0x91   :  { %4307 = vmatprep.mubr.msk.f32.mxu0 %vm63_vm2, %v5607_v57  ;;  %v98_v57 = vrot.slane %v5868_v46, 6  ;;  %v249_v46 = vrot.slane %v5903_v26, 2 }
  0x94   :  { %4308 = vmatmul.mubr.f32.gmra.mrb[18].mxu0 %v5611_v58  ;;  %v132_v58 = vsel %vm114_vm0, %v95_v44, %v96_v51  ;;  %v7198_v44 = vld [vmem:[#allocation7_spill] sm:$0xff] }
  0x95   :  { %4310 = vmatprep.mubr.f32.mxu0 %v5615_v63  ;;  %v99_v63 = vrot.slane %v5881_v38, 6 }
  0x98   :  { %4311 = vmatmul.mubr.msk.f32.gmra.mrb[20].mxu0 %vm63_vm2, %v5619_v1  ;;  %v131_v1 = vsel %vm114_vm0, %v96_v51, %v97_v52  ;;  %v7199_v51 = vld [vmem:[#allocation8_spill] sm:$0xff] }
  0x99   :  { %4313 = vmatprep.mubr.f32.mxu0 %v5623_v33  ;;  %v135_v33 = vsel %vm114_vm0, %v7192_v50, %v93_v19  ;;  %v108_v19 = vrot.slane %v7197_v39, 6  ;;  %v109_v50 = vrot.slane %v7198_v44, 6 }
  0x9c   :  { %4314 = vmatmul.mubr.f32.gmra.mrb[22].mxu0 %v5627_v6  ;;  %v100_v6 = vrot.slane %v5890_v53, 6 }
  0x9d   :  { %4316 = vmatprep.mubr.msk.f32.mxu0 %vm63_vm2, %v5637_v14  ;;  %v130_v14 = vsel %vm114_vm0, %v97_v52, %v98_v57  ;;  %v119_v52 = vsel %vm114_vm0, %v108_v19, %v109_v50 }
  0x9e   :  { %v128_v12 = vsel %vm114_vm0, %v99_v63, %v100_v6 }
  0xa0   :  { %4317 = vmatmul.mubr.f32.gmra.mrb[24].mxu0 %v5641_v15  ;;  %v101_v15 = vrot.slane %v5903_v26, 6 }
  0xa1   :  { %4319 = vmatprep.mubr.f32.mxu0 %v5647_v18  ;;  %v129_v18 = vsel %vm114_vm0, %v98_v57, %v99_v63 }
  0xa2   :  { %v127_v49 = vsel %vm114_vm0, %v100_v6, %v101_v15  ;;  %v126_v59 = vsel %vm114_vm0, %v101_v15, %v102_v27  ;;  %v7201_v6 = vld [vmem:[#allocation11_spill] sm:$0xff] }
  0xa4   :  { %4320 = vmatmul.mubr.msk.f32.gmra.mrb[26].mxu0 %vm63_vm2, %v135_v33  ;;  %v120_v33 = vsel %vm114_vm0, %v107_v41, %v108_v19  ;;  %v241_v41 = vrot.slane %v5815_v36, 2  ;;  %v254_v19 = vrot.slane %v7195_v4, 2 }
  0xa5   :  { %4322 = vmatprep.mubr.f32.mxu0 %v134_v55  ;;  %v110_v55 = vrot.slane %v7199_v51, 6 }
  0xa8   :  { %4323 = vmatmul.mubr.f32.gmra.mrb[28].mxu0 %v133_v56  ;;  %v7200_v56 = vld [vmem:[#allocation10_spill] sm:$0xff] }
  0xa9   :  { %4325 = vmatprep.mubr.msk.f32.mxu0 %vm63_vm2, %v132_v58  ;;  %v111_v57 = vrot.slane %v7200_v56, 6  ;;  %v118_v58 = vsel %vm114_vm0, %v109_v50, %v110_v55  ;;  %v255_v50 = vrot.slane %v7196_v34, 2  ;;  %v258_v34 = vrot.slane %v7199_v51, 2 }
  0xab   :  { %v117_v63 = vsel %vm114_vm0, %v110_v55, %v111_v57  ;;  %v257_v55 = vrot.slane %v7198_v44, 2  ;;  %v260_v44 = vrot.slane %v7201_v6, 2 }
  0xac   :  { %4326 = vmatmul.mubr.f32.gmra.mrb[30].mxu0 %v131_v1  ;;  %v214_v1 = vrot.slane %v5325_v9, 2 }
  0xad   :  { %4328 = vmatprep.mubr.f32.mxu0 %v130_v14  ;;  %v7202_v14 = vrot.slane %v7201_v6, 6 }
  0xaf   :  { %v116_v15 = vsel %vm114_vm0, %v111_v57, %v7202_v14  ;;  %v259_v57 = vrot.slane %v7200_v56, 2 }
  0xb0   :  { %4329 = vmatmul.mubr.msk.f32.gmra.mrb[32].mxu0 %vm63_vm2, %v129_v18  ;;  %v7203_v18 = vrot.slane %v5345_v17, 2  ;;  %v7204_v17 = vld [vmem:[#allocation12_spill] sm:$0xff] }
  0xb1   :  { %4331 = vmatprep.mubr.f32.mxu0 %v128_v12  ;;  %v6161_v12 = vadd.s32 16, %v5340_v16  ;;  %v264_v51 = vsel %vm262_vm1, %v259_v57, %v260_v44 }
  0xb2   :  { %v309_v27 = vsel %vm262_vm1, %v214_v1, %v7203_v18 }
  0xb3   :  { %vm213_vm3 = vcmp.lt.s32.totalorder %v6161_v12, 22 }
  0xb4   :  { %4332 = vmatmul.mubr.f32.gmra.mrb[34].mxu0 %v127_v49  ;;  %v7206_v49 = vld [vmem:[#allocation14_spill] sm:$0xff] }
  0xb5   :  { %4334 = vmatprep.mubr.msk.f32.mxu0 %vm63_vm2, %v126_v59  ;;  %v7207_v59 = vld [vmem:[#allocation15_spill] sm:$0xff] }
  0xb8   :  { %4335 = vmatmul.mubr.f32.gmra.mrb[36].mxu0 %v125_v0  ;;  %v7211_v0 = vld [vmem:[#allocation19_spill] sm:$0xff] }
  0xb9   :  { %4337 = vmatprep.mubr.f32.mxu0 %v124_v22  ;;  %v7214_v22 = vld [vmem:[#allocation22_spill] sm:$0xff] }
  0xbc   :  { %4338 = vmatmul.mubr.msk.f32.gmra.mrb[38].mxu0 %vm63_vm2, %v123_v31  ;;  %v7216_v31 = vld [vmem:[#allocation24_spill] sm:$0xff] }
  0xbd   :  { %4340 = vmatprep.mubr.f32.mxu0 %v122_v61  ;;  %v253_v61 = vrot.slane %v7194_v23, 2  ;;  %v256_v23 = vrot.slane %v7197_v39, 2  ;;  %v266_v39 = vsel %vm262_vm1, %v257_v55, %v258_v34 }
  0xbf   :  { %v268_v4 = vsel %vm262_vm1, %v255_v50, %v256_v23 }
  0xc0   :  { %4341 = vmatmul.mubr.f32.gmra.mrb[40].mxu0 %v121_v54 }
  0xc1   :  { %4343 = vmatprep.mubr.msk.f32.mxu0 %vm63_vm2, %v120_v33  ;;  %v269_v33 = vsel %vm262_vm1, %v254_v19, %v255_v50 }
  0xc4   :  { %4344 = vmatmul.mubr.f32.gmra.mrb[42].mxu0 %v119_v52  ;;  %v267_v52 = vsel %vm262_vm1, %v256_v23, %v257_v55 }
  0xc5   :  { %4346 = vmatprep.mubr.f32.mxu0 %v118_v58  ;;  %v265_v58 = vsel %vm262_vm1, %v258_v34, %v259_v57 }
  0xc8   :  { %4347 = vmatmul.mubr.msk.f32.gmra.mrb[44].mxu0 %vm63_vm2, %v117_v63  ;;  %v7217_v63 = vld [vmem:[#allocation9_spill] sm:$0xff] }
  0xc9   :  { %4349 = vmatprep.mubr.f32.mxu0 %v116_v15  ;;  %v261_v14 = vrot.slane %v7217_v63, 2  ;;  %v5285_v15 = vmov 0.0|0.0  }
  0xca   :  { %4833 = vmatprep.subr.bf16.mxu1 %v5285_v15  ;;  %4945 = vmatprep.subr.bf16.mxu0 %v5285_v15 }
  0xcb   :  { %v263_v56 = vsel %vm262_vm1, %v260_v44, %v261_v14  ;;  %v310_v6 = vsel %vm262_vm1, %v261_v14, %v214_v1 }
  0xcc   :  { %4350 = vmatmul.mubr.f32.gmra.mrb[46].mxu0 %v5779_v25  ;;  %v7208_v25 = vld [vmem:[#allocation16_spill] sm:$0xff] }
  0xcd   :  { %4384 = vmatprep.mubr.f32.mxu0 %v309_v27 }
  0xd0   :  { %4385 = vmatmul.mubr.f32.vlgmr.msra.gmra.mrb[0].mxu0 %v5790_v29  ;;  %v7210_v29 = vld [vmem:[#allocation18_spill] sm:$0xff] }
  0xd1   :  { %4387 = vmatprep.mubr.msk.f32.mxu0 %vm213_vm3, %v5796_v7  ;;  %v7212_v7 = vld [vmem:[#allocation20_spill] sm:$0xff] }
  0xd4   :  { %4388 = vmatmul.mubr.f32.gmra.mrb[2].mxu0 %v7204_v17 }
  0xd5   :  { %4390 = vmatprep.mubr.f32.mxu0 %v7205_v13 }
  0xd8   :  { %4391 = vmatmul.mubr.msk.f32.gmra.mrb[4].mxu0 %vm213_vm3, %v7206_v49 }
  0xd9   :  { %4393 = vmatprep.mubr.f32.mxu0 %v7207_v59 }
  0xdc   :  { %4394 = vmatmul.mubr.f32.gmra.mrb[6].mxu0 %v7208_v25  ;;  %v5287_v25 = vmov 0.0  }
  0xdd   :  { %4396 = vmatprep.mubr.msk.f32.mxu0 %vm213_vm3, %v7209_v48  ;;  %4462 = vmatprep.mubr.msk.f32.mxu1 %vm5286_vm4, %v5287_v25  ;;  %v6320_v48 = vld [vmem:[%s7140_s1 + $0x180] ss:$0 sm:$0xff] }
  0xe0   :  { %4397 = vmatmul.mubr.f32.gmra.mrb[8].mxu0 %v7210_v29 }
  0xe1   :  { %4399 = vmatprep.mubr.f32.mxu0 %v7211_v0 }
  0xe4   :  { %4400 = vmatmul.mubr.msk.f32.gmra.mrb[10].mxu0 %vm213_vm3, %v7212_v7 }
  0xe5   :  { %4402 = vmatprep.mubr.f32.mxu0 %v7213_v5 }
  0xe8   :  { %4403 = vmatmul.mubr.f32.gmra.mrb[12].mxu0 %v7214_v22 }
  0xe9   :  { %4405 = vmatprep.mubr.msk.f32.mxu0 %vm213_vm3, %v7215_v47 }
  0xec   :  { %4406 = vmatmul.mubr.f32.gmra.mrb[14].mxu0 %v7216_v31 }
  0xed   :  { %4408 = vmatprep.mubr.f32.mxu0 %v5948_v8  ;;  %v242_v8 = vrot.slane %v5824_v40, 2  ;;  %v245_v40 = vrot.slane %v5859_v10, 2  ;;  %v248_v10 = vrot.slane %v5890_v53, 2  ;;  %v251_v53 = vrot.slane %v5925_v28, 2 }
  0xef   :  { %v282_v36 = vsel %vm262_vm1, %v241_v41, %v242_v8 }
  0xf0   :  { %4409 = vmatmul.mubr.msk.f32.gmra.mrb[16].mxu0 %vm213_vm3, %v5955_v2  ;;  %v243_v2 = vrot.slane %v5837_v43, 2 }
  0xf1   :  { %4411 = vmatprep.mubr.f32.mxu0 %v5967_v11  ;;  %v283_v11 = vsel %vm262_vm1, %v240_v21, %v241_v41 }
  0xf2   :  { %v281_v43 = vsel %vm262_vm1, %v242_v8, %v243_v2 }
  0xf4   :  { %4412 = vmatmul.mubr.f32.gmra.mrb[18].mxu0 %v5974_v35  ;;  %v244_v35 = vrot.slane %v5846_v42, 2  ;;  %v247_v42 = vrot.slane %v5881_v38, 2  ;;  %v250_v38 = vrot.slane %v5912_v60, 2 }
  0xf5   :  { %4414 = vmatprep.mubr.msk.f32.mxu0 %vm213_vm3, %v5988_v37 }
  0xf6   :  { %v280_v37 = vsel %vm262_vm1, %v243_v2, %v244_v35  ;;  %v277_v21 = vsel %vm262_vm1, %v246_v30, %v247_v42  ;;  %v274_v26 = vsel %vm262_vm1, %v249_v46, %v250_v38  ;;  %v273_v60 = vsel %vm262_vm1, %v250_v38, %v251_v53 }
  0xf8   :  { %4415 = vmatmul.mubr.f32.gmra.mrb[20].mxu0 %v5994_v32  ;;  %v279_v32 = vsel %vm262_vm1, %v244_v35, %v245_v40 }
  0xf9   :  { %4417 = vmatprep.mubr.f32.mxu0 %v6006_v62  ;;  %v278_v62 = vsel %vm262_vm1, %v245_v40, %v246_v30 }
  0xfc   :  { %4418 = vmatmul.mubr.msk.f32.gmra.mrb[22].mxu0 %vm213_vm3, %v6014_v3  ;;  %v276_v3 = vsel %vm262_vm1, %v247_v42, %v248_v10 }
  0xfd   :  { %4420 = vmatprep.mubr.f32.mxu0 %v6025_v24  ;;  %v275_v24 = vsel %vm262_vm1, %v248_v10, %v249_v46 }
 0x100   :  { %4421 = vmatmul.mubr.f32.gmra.mrb[24].mxu0 %v6032_v45  ;;  %v252_v45 = vrot.slane %v7193_v20, 2  ;;  %v270_v20 = vsel %vm262_vm1, %v253_v61, %v254_v19 }
 0x101   :  { %4423 = vmatprep.mubr.msk.f32.mxu0 %vm213_vm3, %v283_v11 }
 0x102   :  { %v272_v28 = vsel %vm262_vm1, %v251_v53, %v252_v45  ;;  %v271_v54 = vsel %vm262_vm1, %v252_v45, %v253_v61 }
 0x104   :  { %4424 = vmatmul.mubr.f32.gmra.mrb[26].mxu0 %v282_v36 }
 0x105   :  { %4426 = vmatprep.mubr.f32.mxu0 %v281_v43 }
 0x108   :  { %4427 = vmatmul.mubr.msk.f32.gmra.mrb[28].mxu0 %vm213_vm3, %v280_v37 }
 0x109   :  { %4429 = vmatprep.mubr.f32.mxu0 %v279_v32  ;;  %v6293_v18 = vpop.f32.mrb[0].mxu1 }
 0x10a   :  { %v6295_v27 = vpop.f32.mrb[1].mxu1 }
 0x10c   :  { %4430 = vmatmul.mubr.f32.gmra.mrb[30].mxu0 %v278_v62 }
 0x10d   :  { %4432 = vmatprep.mubr.msk.f32.mxu0 %vm213_vm3, %v277_v21 }
 0x10e   :  { %v6297_v17 = vpop.f32.mrb[2].mxu1 }
 0x10f   :  { %v6299_v13 = vpop.f32.mrb[3].mxu1 }
 0x110   :  { %4433 = vmatmul.mubr.f32.gmra.mrb[32].mxu0 %v276_v3 }
 0x111   :  { %4435 = vmatprep.mubr.f32.mxu0 %v275_v24 }
 0x112   :  { %v6301_v49 = vpop.f32.mrb[4].mxu1 }
 0x113   :  { %v6303_v59 = vpop.f32.mrb[5].mxu1 }
 0x114   :  { %4436 = vmatmul.mubr.msk.f32.gmra.mrb[34].mxu0 %vm213_vm3, %v274_v26 }
 0x115   :  { %4438 = vmatprep.mubr.f32.mxu0 %v273_v60 }
 0x116   :  { %v6305_v9 = vpop.f32.mrb[6].mxu1 }
 0x117   :  { %v6307_v16 = vpop.f32.mrb[7].mxu1 }
 0x118   :  { %4439 = vmatmul.mubr.f32.gmra.mrb[36].mxu0 %v272_v28 }
 0x119   :  { %4441 = vmatprep.mubr.msk.f32.mxu0 %vm213_vm3, %v271_v54 }
 0x11a   :  { %v6309_v1 = vpop.f32.mrb[8].mxu1 }
 0x11b   :  { %v6311_v12 = vpop.f32.mrb[9].mxu1 }
 0x11c   :  { %4442 = vmatmul.mubr.f32.gmra.mrb[38].mxu0 %v270_v20 }
 0x11d   :  { %4444 = vmatprep.mubr.f32.mxu0 %v269_v33 }
 0x120   :  { %4445 = vmatmul.mubr.msk.f32.gmra.mrb[40].mxu0 %vm213_vm3, %v268_v4 }
 0x121   :  { %4447 = vmatprep.mubr.f32.mxu0 %v267_v52 }
 0x124   :  { %4448 = vmatmul.mubr.f32.gmra.mrb[42].mxu0 %v266_v39 }
 0x125   :  { %4450 = vmatprep.mubr.msk.f32.mxu0 %vm213_vm3, %v265_v58 }
 0x128   :  { %4451 = vmatmul.mubr.f32.gmra.mrb[44].mxu0 %v264_v51 }
 0x129   :  { %4453 = vmatprep.mubr.f32.mxu0 %v263_v56 }
 0x12c   :  { %4454 = vmatmul.mubr.msk.f32.gmra.mrb[46].mxu0 %vm213_vm3, %v310_v6 }
 0x12d   :  { %4728 = vmatprep.mubr.msk.f32.mxu0 %vm5286_vm4, %v5287_v25 }
 0x1a3   :  { %v4386_v29 = vpop.f32.mrb[0].mxu0 }
 0x1a4   :  { %v1376_v0 = vadd.f32 %v4386_v29, %v6320_v48  ;;  %v1083_v7 = vpop.f32.mrb[1].mxu0 }
 0x1a5   :  { %v1375_v5 = vadd.f32 %v6320_v48, %v1083_v7 }
 0x1a7   :  { %v4834_v47 = vpack.c.bf16 %v1376_v0, %v1375_v5  ;;  %1429 = vrot.lane.b32.xlu0 %v1375_v5, %s5288_s6  ;;  %v4389_v31 = vpop.f32.mrb[2].mxu0 }
 0x1a8   :  { %v1093_v41 = vpop.f32.mrb[3].mxu0  ;;  %v6338_v35 = vadd.f32 %v4389_v31, %v6320_v48 }
 0x1a9   :  { %v1377_v8 = vadd.f32 %v6320_v48, %v1093_v41  ;;  %4836 = vmatpush3.bf16.xpose.msk.msra.mxu1 %vm6326_vm6, %v4834_v47 }
 0x1aa   :  { %4460 = vmatprep.subr.mxu1 %v5287_v25 }
 0x1ab   :  { %1431 = vrot.lane.b32.xlu0 %v1376_v0, %s5288_s6  ;;  %1433 = vrot.lane.b32.xlu1 %v1377_v8, %s5288_s6  ;;  %v4392_v2 = vpop.f32.mrb[4].mxu0 }
 0x1ac   :  { %v1103_v11 = vpop.f32.mrb[5].mxu0  ;;  %v6353_v42 = vadd.f32 %v4392_v2, %v6320_v48 }
 0x1ad   :  { %v6341_v36 = vadd.f32 %v6320_v48, %v1103_v11 }
 0x1af   :  { %v4838_v40 = vpack.c.bf16 %v6341_v36, %v6338_v35  ;;  %1531 = vrot.lane.b32.xlu1 %v6338_v35, %s5288_s6  ;;  %1533 = vrot.lane.b32.xlu0 %v6341_v36, %s5288_s6  ;;  %v4395_v43 = vpop.f32.mrb[6].mxu0 }
 0x1b0   :  { %v6350_v30 = vadd.f32 %v4395_v43, %v6320_v48  ;;  %v1113_v37 = vpop.f32.mrb[7].mxu0 }
 0x1b1   :  { %v6356_v32 = vadd.f32 %v6320_v48, %v1113_v37  ;;  %4461 = vmatpush3.xpose.msk.msra.mxu1 %vm1435_vm5, %v1377_v8 }
 0x1b2   :  { %4837 = vmatprep.subr.bf16.mxu1 %v5285_v15 }
 0x1b3   :  { %v4842_v10 = vpack.c.bf16 %v6350_v30, %v6356_v32  ;;  %1535 = vrot.lane.b32.xlu1 %v6353_v42, %s5288_s6  ;;  %1632 = vrot.lane.b32.xlu0 %v6356_v32, %s5288_s6  ;;  %v4398_v62 = vpop.f32.mrb[8].mxu0 }
 0x1b4   :  { %v1123_v46 = vpop.f32.mrb[9].mxu0  ;;  %v6374_v53 = vadd.f32 %v4398_v62, %v6320_v48 }
 0x1b5   :  { %v6367_v21 = vadd.f32 %v6320_v48, %v1123_v46 }
 0x1b7   :  { %1634 = vrot.lane.b32.xlu1 %v6350_v30, %s5288_s6  ;;  %1636 = vrot.lane.b32.xlu0 %v6367_v21, %s5288_s6  ;;  %v4401_v38 = vpop.f32.mrb[10].mxu0 }
 0x1b8   :  { %v1133_v3 = vpop.f32.mrb[11].mxu0  ;;  %v6389_v28 = vadd.f32 %v4401_v38, %v6320_v48 }
 0x1b9   :  { %v6377_v24 = vadd.f32 %v6320_v48, %v1133_v3 }
 0x1bb   :  { %v4846_v26 = vpack.c.bf16 %v6377_v24, %v6374_v53  ;;  %1733 = vrot.lane.b32.xlu1 %v6374_v53, %s5288_s6  ;;  %1735 = vrot.lane.b32.xlu0 %v6377_v24, %s5288_s6  ;;  %v4404_v45 = vpop.f32.mrb[12].mxu0 }
 0x1bc   :  { %v6386_v60 = vadd.f32 %v4404_v45, %v6320_v48  ;;  %v1143_v61 = vpop.f32.mrb[13].mxu0 }
 0x1bd   :  { %v6392_v19 = vadd.f32 %v6320_v48, %v1143_v61 }
 0x1bf   :  { %v4850_v54 = vpack.c.bf16 %v6386_v60, %v6392_v19  ;;  %1737 = vrot.lane.b32.xlu1 %v6389_v28, %s5288_s6  ;;  %1834 = vrot.lane.b32.xlu0 %v6392_v19, %s5288_s6  ;;  %v4407_v50 = vpop.f32.mrb[14].mxu0 }
 0x1c0   :  { %v1153_v20 = vpop.f32.mrb[15].mxu0  ;;  %v6408_v4 = vadd.f32 %v4407_v50, %v6320_v48 }
 0x1c1   :  { %v6401_v23 = vadd.f32 %v6320_v48, %v1153_v20 }
 0x1c3   :  { %1836 = vrot.lane.b32.xlu1 %v6386_v60, %s5288_s6  ;;  %1838 = vrot.lane.b32.xlu0 %v6401_v23, %s5288_s6  ;;  %v4410_v33 = vpop.f32.mrb[16].mxu0 }
 0x1c4   :  { %v1163_v55 = vpop.f32.mrb[17].mxu0  ;;  %v6423_v58 = vadd.f32 %v4410_v33, %v6320_v48 }
 0x1c5   :  { %v6411_v34 = vadd.f32 %v6320_v48, %v1163_v55 }
 0x1c7   :  { %v4854_v52 = vpack.c.bf16 %v6411_v34, %v6408_v4  ;;  %1935 = vrot.lane.b32.xlu1 %v6408_v4, %s5288_s6  ;;  %1937 = vrot.lane.b32.xlu0 %v6411_v34, %s5288_s6  ;;  %v4413_v57 = vpop.f32.mrb[18].mxu0 }
 0x1c8   :  { %v6420_v39 = vadd.f32 %v4413_v57, %v6320_v48  ;;  %v1173_v44 = vpop.f32.mrb[19].mxu0 }
 0x1c9   :  { %v6426_v63 = vadd.f32 %v6320_v48, %v1173_v44 }
 0x1cb   :  { %1939 = vrot.lane.b32.xlu1 %v6423_v58, %s5288_s6  ;;  %2036 = vrot.lane.b32.xlu0 %v6426_v63, %s5288_s6  ;;  %v4416_v51 = vpop.f32.mrb[20].mxu0  ;;  %v7220_v19 = vpack.c.bf16 %v6420_v39, %v6426_v63 }
 0x1cc   :  { %v1183_v56 = vpop.f32.mrb[21].mxu0  ;;  %v6442_v7 = vadd.f32 %v4416_v51, %v6320_v48 }
 0x1cd   :  { %v6435_v6 = vadd.f32 %v6320_v48, %v1183_v56 }
 0x1cf   :  { %2038 = vrot.lane.b32.xlu1 %v6420_v39, %s5288_s6  ;;  %2040 = vrot.lane.b32.xlu0 %v6435_v6, %s5288_s6  ;;  %v4419_v29 = vpop.f32.mrb[22].mxu0 }
 0x1d0   :  { %v1193_v0 = vpop.f32.mrb[23].mxu0  ;;  %v6457_v2 = vadd.f32 %v4419_v29, %v6320_v48 }
 0x1d1   :  { %v6445_v5 = vadd.f32 %v6320_v48, %v1193_v0 }
 0x1d3   :  { %2137 = vrot.lane.b32.xlu1 %v6442_v7, %s5288_s6  ;;  %2139 = vrot.lane.b32.xlu0 %v6445_v5, %s5288_s6  ;;  %v4422_v31 = vpop.f32.mrb[24].mxu0  ;;  %v7221_v34 = vpack.c.bf16 %v6445_v5, %v6442_v7 }
 0x1d4   :  { %v6454_v41 = vadd.f32 %v4422_v31, %v6320_v48  ;;  %v1203_v8 = vpop.f32.mrb[25].mxu0 }
 0x1d5   :  { %v6460_v11 = vadd.f32 %v6320_v48, %v1203_v8 }
 0x1d7   :  { %2141 = vrot.lane.b32.xlu1 %v6457_v2, %s5288_s6  ;;  %2238 = vrot.lane.b32.xlu0 %v6460_v11, %s5288_s6  ;;  %v4425_v37 = vpop.f32.mrb[26].mxu0  ;;  %v7222_v63 = vpack.c.bf16 %v6454_v41, %v6460_v11 }
 0x1d8   :  { %v1213_v62 = vpop.f32.mrb[27].mxu0  ;;  %v6476_v45 = vadd.f32 %v4425_v37, %v6320_v48 }
 0x1d9   :  { %v6469_v46 = vadd.f32 %v6320_v48, %v1213_v62 }
 0x1db   :  { %2240 = vrot.lane.b32.xlu1 %v6454_v41, %s5288_s6  ;;  %2242 = vrot.lane.b32.xlu0 %v6469_v46, %s5288_s6  ;;  %v4428_v38 = vpop.f32.mrb[28].mxu0 }
 0x1dc   :  { %v1223_v3 = vpop.f32.mrb[29].mxu0  ;;  %v6491_v57 = vadd.f32 %v4428_v38, %v6320_v48 }
 0x1dd   :  { %v6479_v61 = vadd.f32 %v6320_v48, %v1223_v3 }
 0x1df   :  { %2339 = vrot.lane.b32.xlu1 %v6476_v45, %s5288_s6  ;;  %2341 = vrot.lane.b32.xlu0 %v6479_v61, %s5288_s6  ;;  %v4431_v20 = vpop.f32.mrb[30].mxu0  ;;  %v7223_v41 = vpack.c.bf16 %v6479_v61, %v6476_v45 }
 0x1e0   :  { %v6488_v33 = vadd.f32 %v4431_v20, %v6320_v48  ;;  %v1233_v55 = vpop.f32.mrb[31].mxu0 }
 0x1e1   :  { %v6494_v44 = vadd.f32 %v6320_v48, %v1233_v55 }
 0x1e3   :  { %2343 = vrot.lane.b32.xlu1 %v6491_v57, %s5288_s6  ;;  %2440 = vrot.lane.b32.xlu0 %v6494_v44, %s5288_s6  ;;  %v4434_v56 = vpop.f32.mrb[32].mxu0  ;;  %v7224_v45 = vpack.c.bf16 %v6488_v33, %v6494_v44 }
 0x1e4   :  { %v1243_v29 = vpop.f32.mrb[33].mxu0  ;;  %v6510_v37 = vadd.f32 %v4434_v56, %v6320_v48 }
 0x1e5   :  { %v6503_v0 = vadd.f32 %v6320_v48, %v1243_v29 }
 0x1e7   :  { %2442 = vrot.lane.b32.xlu1 %v6488_v33, %s5288_s6  ;;  %2444 = vrot.lane.b32.xlu0 %v6503_v0, %s5288_s6  ;;  %v4437_v31 = vpop.f32.mrb[34].mxu0 }
 0x1e8   :  { %v1253_v8 = vpop.f32.mrb[35].mxu0  ;;  %v6525_v56 = vadd.f32 %v4437_v31, %v6320_v48 }
 0x1e9   :  { %v6513_v62 = vadd.f32 %v6320_v48, %v1253_v8 }
 0x1eb   :  { %2541 = vrot.lane.b32.xlu1 %v6510_v37, %s5288_s6  ;;  %2543 = vrot.lane.b32.xlu0 %v6513_v62, %s5288_s6  ;;  %v4440_v3 = vpop.f32.mrb[36].mxu0  ;;  %v7225_v44 = vpack.c.bf16 %v6513_v62, %v6510_v37 }
 0x1ec   :  { %v6522_v20 = vadd.f32 %v4440_v3, %v6320_v48  ;;  %v1263_v55 = vpop.f32.mrb[37].mxu0 }
 0x1ed   :  { %v6528_v29 = vadd.f32 %v6320_v48, %v1263_v55 }
 0x1ef   :  { %2545 = vrot.lane.b32.xlu1 %v6525_v56, %s5288_s6  ;;  %2642 = vrot.lane.b32.xlu0 %v6528_v29, %s5288_s6  ;;  %v4443_v38 = vpop.f32.mrb[38].mxu0  ;;  %v7226_v62 = vpack.c.bf16 %v6522_v20, %v6528_v29 }
 0x1f0   :  { %v4993_v3 = vadd.f32 %v4443_v38, %v6293_v18  ;;  %v1273_v51 = vpop.f32.mrb[39].mxu0 }
 0x1f1   :  { %v4994_v50 = vadd.f32 %v1273_v51, %v6295_v27 }
 0x1f2   :  { %v6545_v47 = vadd.f32 %v4993_v3, %v6320_v48 }
 0x1f3   :  { %v6539_v31 = vadd.f32 %v4994_v50, %v6320_v48  ;;  %2644 = vrot.lane.b32.xlu1 %v6522_v20, %s5288_s6  ;;  %v4446_v55 = vpop.f32.mrb[40].mxu0 }
 0x1f4   :  { %v4995_v8 = vadd.f32 %v4446_v55, %v6297_v17  ;;  %v1283_v43 = vpop.f32.mrb[41].mxu0 }
 0x1f5   :  { %v4996_v14 = vadd.f32 %v1283_v43, %v6299_v13  ;;  %2646 = vrot.lane.b32.xlu0 %v6539_v31, %s5288_s6 }
 0x1f6   :  { %v6557_v17 = vadd.f32 %v4995_v8, %v6320_v48 }
 0x1f7   :  { %v6551_v18 = vadd.f32 %v4996_v14, %v6320_v48  ;;  %2743 = vrot.lane.b32.xlu1 %v6545_v47, %s5288_s6  ;;  %v4449_v27 = vpop.f32.mrb[42].mxu0 }
 0x1f8   :  { %v4997_v50 = vadd.f32 %v4449_v27, %v6301_v49  ;;  %v1293_v51 = vpop.f32.mrb[43].mxu0 }
 0x1f9   :  { %v4886_v38 = vpack.c.bf16 %v6551_v18, %v6545_v47  ;;  %v4998_v13 = vadd.f32 %v1293_v51, %v6303_v59  ;;  %2745 = vrot.lane.b32.xlu0 %v6551_v18, %s5288_s6 }
 0x1fa   :  { %v6565_v14 = vadd.f32 %v4997_v50, %v6320_v48 }
 0x1fb   :  { %v6568_v43 = vadd.f32 %v4998_v13, %v6320_v48  ;;  %2747 = vrot.lane.b32.xlu1 %v6557_v17, %s5288_s6  ;;  %v4452_v49 = vpop.f32.mrb[44].mxu0 }
 0x1fc   :  { %v4999_v8 = vadd.f32 %v4452_v49, %v6305_v9  ;;  %v1303_v3 = vpop.f32.mrb[45].mxu0 }
 0x1fd   :  { %v4890_v55 = vpack.c.bf16 %v6565_v14, %v6568_v43  ;;  %v5000_v59 = vadd.f32 %v1303_v3, %v6307_v16  ;;  %2844 = vrot.lane.b32.xlu0 %v6568_v43, %s5288_s6 }
 0x1fe   :  { %v6585_v9 = vadd.f32 %v4999_v8, %v6320_v48 }
 0x1ff   :  { %v6579_v27 = vadd.f32 %v5000_v59, %v6320_v48  ;;  %2846 = vrot.lane.b32.xlu1 %v6565_v14, %s5288_s6  ;;  %v4455_v50 = vpop.f32.mrb[46].mxu0 }
 0x200   :  { %v5001_v51 = vadd.f32 %v4455_v50, %v6309_v1  ;;  %v1313_v13 = vpop.f32.mrb[47].mxu0 }
 0x201   :  { %v5002_v49 = vadd.f32 %v1313_v13, %v6311_v12  ;;  %2848 = vrot.lane.b32.xlu0 %v6579_v27, %s5288_s6 }
 0x202   :  { %v6596_v3 = vadd.f32 %v5001_v51, %v6320_v48  ;;  %v6883_v51 = vld [vmem:[%s7140_s1 + $0x188] sm:$0xff] }
 0x203   :  { %v6591_v16 = vadd.f32 %v5002_v49, %v6320_v48  ;;  %2945 = vrot.lane.b32.xlu1 %v6585_v9, %s5288_s6 }
 0x205   :  { %v4894_v1 = vpack.c.bf16 %v6591_v16, %v6585_v9  ;;  %2947 = vrot.lane.b32.xlu0 %v6591_v16, %s5288_s6  ;;  %v6889_v16 = vld [vmem:[%s7140_s1 + $0x190] sm:$0xff] }
 0x207   :  { %2949 = vrot.lane.b32.xlu1 %v6596_v3, %s5288_s6 }
 0x219   :  { %v1430_v12 = vpop.permute.xlu0 %1429 }
 0x21a   :  { %4463 = vmatmul.mubr.msk.f32.vlgmr.msra.gmra.mrb[10].mxu1 %vm1435_vm5, %v1430_v12 }
 0x21b   :  { %4840 = vmatpush3.bf16.xpose.msk.msra.mxu1 %vm6326_vm6, %v4838_v40  ;;  %4465 = vmatprep.mubr.msk.f32.mxu1 %vm5286_vm4, %v5287_v25 }
 0x21c   :  { %4475 = vmatprep.subr.mxu1 %v5287_v25 }
 0x21d   :  { %v1432_v48 = vpop.permute.xlu0 %1431  ;;  %v1434_v8 = vpop.permute.xlu1 %1433 }
 0x21e   :  { %4466 = vmatmul.mubr.msk.f32.gmra.mrb[12].mxu1 %vm1435_vm5, %v1432_v48 }
 0x21f   :  { %4468 = vmatprep.mubr.msk.f32.mxu1 %vm5286_vm4, %v5287_v25 }
 0x221   :  { %v1532_v35 = vpop.permute.xlu1 %1531  ;;  %v1534_v36 = vpop.permute.xlu0 %1533 }
 0x222   :  { %4469 = vmatmul.mubr.msk.f32.gmra.mrb[14].mxu1 %vm1435_vm5, %v1434_v8 }
 0x223   :  { %4476 = vmatpush3.xpose.msk.msra.mxu1 %vm1435_vm5, %v6353_v42  ;;  %4477 = vmatprep.mubr.msk.f32.mxu1 %vm5286_vm4, %v5287_v25 }
 0x224   :  { %4841 = vmatprep.subr.bf16.mxu1 %v5285_v15 }
 0x225   :  { %v1536_v40 = vpop.permute.xlu1 %1535  ;;  %v1633_v30 = vpop.permute.xlu0 %1632 }
 0x226   :  { %4478 = vmatmul.mubr.msk.f32.vlgmr.msra.gmra.mrb[16].mxu1 %vm1435_vm5, %v1532_v35  ;;  %v6895_v35 = vld [vmem:[%s7140_s1 + $0x198] sm:$0xff] }
 0x227   :  { %4844 = vmatpush3.bf16.xpose.msk.msra.mxu1 %vm6326_vm6, %v4842_v10  ;;  %4480 = vmatprep.mubr.msk.f32.mxu1 %vm5286_vm4, %v5287_v25 }
 0x228   :  { %4490 = vmatprep.subr.mxu1 %v5287_v25 }
 0x229   :  { %v1635_v42 = vpop.permute.xlu1 %1634  ;;  %v1637_v32 = vpop.permute.xlu0 %1636 }
 0x22a   :  { %4481 = vmatmul.mubr.msk.f32.gmra.mrb[18].mxu1 %vm1435_vm5, %v1534_v36 }
 0x22b   :  { %4483 = vmatprep.mubr.msk.f32.mxu1 %vm5286_vm4, %v5287_v25 }
 0x22d   :  { %v1734_v10 = vpop.permute.xlu1 %1733 }
 0x22e   :  { %4484 = vmatmul.mubr.msk.f32.gmra.mrb[20].mxu1 %vm1435_vm5, %v1536_v40 }
 0x22f   :  { %4491 = vmatpush3.xpose.msk.msra.mxu1 %vm1435_vm5, %v6367_v21  ;;  %4492 = vmatprep.mubr.msk.f32.mxu1 %vm5286_vm4, %v5287_v25  ;;  %v1736_v21 = vpop.permute.xlu0 %1735 }
 0x230   :  { %4845 = vmatprep.subr.bf16.mxu1 %v5285_v15 }
 0x231   :  { %v1738_v53 = vpop.permute.xlu1 %1737 }
 0x232   :  { %4493 = vmatmul.mubr.msk.f32.vlgmr.msra.gmra.mrb[22].mxu1 %vm1435_vm5, %v1633_v30 }
 0x233   :  { %4848 = vmatpush3.bf16.xpose.msk.msra.mxu1 %vm6326_vm6, %v4846_v26  ;;  %4495 = vmatprep.mubr.msk.f32.mxu1 %vm5286_vm4, %v5287_v25  ;;  %v1835_v24 = vpop.permute.xlu0 %1834 }
 0x234   :  { %4505 = vmatprep.subr.mxu1 %v5287_v25 }
 0x235   :  { %v1837_v26 = vpop.permute.xlu1 %1836 }
 0x236   :  { %4496 = vmatmul.mubr.msk.f32.gmra.mrb[24].mxu1 %vm1435_vm5, %v1635_v42 }
 0x237   :  { %4498 = vmatprep.mubr.msk.f32.mxu1 %vm5286_vm4, %v5287_v25  ;;  %v1839_v60 = vpop.permute.xlu0 %1838 }
 0x23a   :  { %4499 = vmatmul.mubr.msk.f32.gmra.mrb[26].mxu1 %vm1435_vm5, %v1637_v32 }
 0x23b   :  { %4506 = vmatpush3.xpose.msk.msra.mxu1 %vm1435_vm5, %v6389_v28  ;;  %4507 = vmatprep.mubr.msk.f32.mxu1 %vm5286_vm4, %v5287_v25  ;;  %v1936_v28 = vpop.permute.xlu1 %1935 }
 0x23c   :  { %4849 = vmatprep.subr.bf16.mxu1 %v5285_v15 }
 0x23e   :  { %4508 = vmatmul.mubr.msk.f32.vlgmr.msra.gmra.mrb[28].mxu1 %vm1435_vm5, %v1734_v10 }
 0x23f   :  { %4852 = vmatpush3.bf16.xpose.msk.msra.mxu1 %vm6326_vm6, %v4850_v54  ;;  %4510 = vmatprep.mubr.msk.f32.mxu1 %vm5286_vm4, %v5287_v25  ;;  %v1938_v54 = vpop.permute.xlu0 %1937 }
 0x240   :  { %4520 = vmatprep.subr.mxu1 %v5287_v25 }
 0x242   :  { %4511 = vmatmul.mubr.msk.f32.gmra.mrb[30].mxu1 %vm1435_vm5, %v1736_v21 }
 0x243   :  { %4513 = vmatprep.mubr.msk.f32.mxu1 %vm5286_vm4, %v5287_v25  ;;  %v2037_v4 = vpop.permute.xlu0 %2036 }
 0x246   :  { %4514 = vmatmul.mubr.msk.f32.gmra.mrb[32].mxu1 %vm1435_vm5, %v1738_v53 }
 0x247   :  { %4521 = vmatpush3.xpose.msk.msra.mxu1 %vm1435_vm5, %v6401_v23  ;;  %4522 = vmatprep.mubr.msk.f32.mxu1 %vm5286_vm4, %v5287_v25  ;;  %v1940_v23 = vpop.permute.xlu1 %1939  ;;  %v2041_v39 = vpop.permute.xlu0 %2040 }
 0x248   :  { %4853 = vmatprep.subr.bf16.mxu1 %v5285_v15 }
 0x24a   :  { %4523 = vmatmul.mubr.msk.f32.vlgmr.msra.gmra.mrb[34].mxu1 %vm1435_vm5, %v1835_v24 }
 0x24b   :  { %4856 = vmatpush3.bf16.xpose.msk.msra.mxu1 %vm6326_vm6, %v4854_v52  ;;  %4525 = vmatprep.mubr.msk.f32.mxu1 %vm5286_vm4, %v5287_v25  ;;  %v2039_v52 = vpop.permute.xlu1 %2038 }
 0x24c   :  { %4535 = vmatprep.subr.mxu1 %v5287_v25 }
 0x24e   :  { %4526 = vmatmul.mubr.msk.f32.gmra.mrb[36].mxu1 %vm1435_vm5, %v1837_v26 }
 0x24f   :  { %4528 = vmatprep.mubr.msk.f32.mxu1 %vm5286_vm4, %v5287_v25 }
 0x252   :  { %4529 = vmatmul.mubr.msk.f32.gmra.mrb[38].mxu1 %vm1435_vm5, %v1839_v60 }
 0x253   :  { %4536 = vmatpush3.xpose.msk.msra.mxu1 %vm1435_vm5, %v6423_v58  ;;  %4537 = vmatprep.mubr.msk.f32.mxu1 %vm5286_vm4, %v5287_v25  ;;  %v2138_v58 = vpop.permute.xlu1 %2137 }
 0x254   :  { %4857 = vmatprep.subr.bf16.mxu1 %v5285_v15 }
 0x256   :  { %4538 = vmatmul.mubr.msk.f32.vlgmr.msra.gmra.mrb[40].mxu1 %vm1435_vm5, %v1936_v28 }
 0x257   :  { %4860 = vmatpush3.bf16.xpose.msk.msra.mxu1 %vm6326_vm6, %v7220_v19  ;;  %4540 = vmatprep.mubr.msk.f32.mxu1 %vm5286_vm4, %v5287_v25  ;;  %v2142_v7 = vpop.permute.xlu1 %2141 }
 0x258   :  { %4550 = vmatprep.subr.mxu1 %v5287_v25 }
 0x25a   :  { %4541 = vmatmul.mubr.msk.f32.gmra.mrb[42].mxu1 %vm1435_vm5, %v1938_v54 }
 0x25b   :  { %4543 = vmatprep.mubr.msk.f32.mxu1 %vm5286_vm4, %v5287_v25 }
 0x25e   :  { %4544 = vmatmul.mubr.msk.f32.gmra.mrb[44].mxu1 %vm1435_vm5, %v1940_v23 }
 0x25f   :  { %4551 = vmatpush3.xpose.msk.msra.mxu1 %vm1435_vm5, %v6435_v6  ;;  %4552 = vmatprep.mubr.msk.f32.mxu1 %vm5286_vm4, %v5287_v25  ;;  %v2140_v6 = vpop.permute.xlu0 %2139 }
 0x260   :  { %4861 = vmatprep.subr.bf16.mxu1 %v5285_v15 }
 0x262   :  { %4553 = vmatmul.mubr.msk.f32.vlgmr.msra.gmra.mrb[46].mxu1 %vm1435_vm5, %v2037_v4 }
 0x263   :  { %4864 = vmatpush3.bf16.xpose.msk.msra.mxu1 %vm6326_vm6, %v7221_v34  ;;  %4555 = vmatprep.mubr.msk.f32.mxu1 %vm5286_vm4, %v5287_v25  ;;  %v2239_v5 = vpop.permute.xlu0 %2238 }
 0x264   :  { %4565 = vmatprep.subr.mxu1 %v5287_v25 }
 0x266   :  { %4556 = vmatmul.mubr.msk.f32.gmra.mrb[48].mxu1 %vm1435_vm5, %v2039_v52 }
 0x267   :  { %4558 = vmatprep.mubr.msk.f32.mxu1 %vm5286_vm4, %v5287_v25  ;;  %v2243_v11 = vpop.permute.xlu0 %2242 }
 0x26a   :  { %4559 = vmatmul.mubr.msk.f32.gmra.mrb[50].mxu1 %vm1435_vm5, %v2041_v39 }
 0x26b   :  { %4566 = vmatpush3.xpose.msk.msra.mxu1 %vm1435_vm5, %v6457_v2  ;;  %4567 = vmatprep.mubr.msk.f32.mxu1 %vm5286_vm4, %v5287_v25  ;;  %v2241_v2 = vpop.permute.xlu1 %2240  ;;  %v2342_v61 = vpop.permute.xlu0 %2341 }
 0x26c   :  { %4865 = vmatprep.subr.bf16.mxu1 %v5285_v15 }
 0x26e   :  { %4568 = vmatmul.mubr.msk.f32.vlgmr.msra.gmra.mrb[52].mxu1 %vm1435_vm5, %v2138_v58 }
 0x26f   :  { %4868 = vmatpush3.bf16.xpose.msk.msra.mxu1 %vm6326_vm6, %v7222_v63  ;;  %4570 = vmatprep.mubr.msk.f32.mxu1 %vm5286_vm4, %v5287_v25  ;;  %v2441_v33 = vpop.permute.xlu0 %2440 }
 0x270   :  { %4580 = vmatprep.subr.mxu1 %v5287_v25 }
 0x272   :  { %4571 = vmatmul.mubr.msk.f32.gmra.mrb[54].mxu1 %vm1435_vm5, %v2140_v6 }
 0x273   :  { %4573 = vmatprep.mubr.msk.f32.mxu1 %vm5286_vm4, %v5287_v25  ;;  %v2445_v59 = vpop.permute.xlu0 %2444 }
 0x276   :  { %4574 = vmatmul.mubr.msk.f32.gmra.mrb[56].mxu1 %vm1435_vm5, %v2142_v7 }
 0x277   :  { %4581 = vmatpush3.xpose.msk.msra.mxu1 %vm1435_vm5, %v6469_v46  ;;  %4582 = vmatprep.mubr.msk.f32.mxu1 %vm5286_vm4, %v5287_v25  ;;  %v2340_v46 = vpop.permute.xlu1 %2339 }
 0x278   :  { %4869 = vmatprep.subr.bf16.mxu1 %v5285_v15 }
 0x27a   :  { %4583 = vmatmul.mubr.msk.f32.vlgmr.msra.gmra.mrb[58].mxu1 %vm1435_vm5, %v2239_v5 }
 0x27b   :  { %4872 = vmatpush3.bf16.xpose.msk.msra.mxu1 %vm6326_vm6, %v7223_v41  ;;  %4585 = vmatprep.mubr.msk.f32.mxu1 %vm5286_vm4, %v5287_v25 }
 0x27c   :  { %4595 = vmatprep.subr.mxu1 %v5287_v25 }
 0x27e   :  { %4586 = vmatmul.mubr.msk.f32.gmra.mrb[60].mxu1 %vm1435_vm5, %v2241_v2 }
 0x27f   :  { %4588 = vmatprep.mubr.msk.f32.mxu1 %vm5286_vm4, %v5287_v25 }
 0x282   :  { %4589 = vmatmul.mubr.msk.f32.gmra.mrb[62].mxu1 %vm1435_vm5, %v2243_v11 }
 0x283   :  { %4596 = vmatpush3.xpose.msk.msra.mxu1 %vm1435_vm5, %v6491_v57  ;;  %4597 = vmatprep.mubr.msk.f32.mxu1 %vm5286_vm4, %v5287_v25  ;;  %v2344_v57 = vpop.permute.xlu1 %2343 }
 0x284   :  { %4873 = vmatprep.subr.bf16.mxu1 %v5285_v15 }
 0x286   :  { %4598 = vmatmul.mubr.msk.f32.vlgmr.msra.gmra.mrb[64].mxu1 %vm1435_vm5, %v2340_v46 }
 0x287   :  { %4876 = vmatpush3.bf16.xpose.msk.msra.mxu1 %vm6326_vm6, %v7224_v45  ;;  %4600 = vmatprep.mubr.msk.f32.mxu1 %vm5286_vm4, %v5287_v25 }
 0x288   :  { %4610 = vmatprep.subr.mxu1 %v5287_v25 }
 0x28a   :  { %4601 = vmatmul.mubr.msk.f32.gmra.mrb[66].mxu1 %vm1435_vm5, %v2342_v61 }
 0x28b   :  { %4603 = vmatprep.mubr.msk.f32.mxu1 %vm5286_vm4, %v5287_v25 }
 0x28e   :  { %4604 = vmatmul.mubr.msk.f32.gmra.mrb[68].mxu1 %vm1435_vm5, %v2344_v57 }
 0x28f   :  { %4611 = vmatpush3.xpose.msk.msra.mxu1 %vm1435_vm5, %v6503_v0  ;;  %4612 = vmatprep.mubr.msk.f32.mxu1 %vm5286_vm4, %v5287_v25  ;;  %v2443_v0 = vpop.permute.xlu1 %2442 }
 0x290   :  { %4877 = vmatprep.subr.bf16.mxu1 %v5285_v15 }
 0x292   :  { %4613 = vmatmul.mubr.msk.f32.vlgmr.msra.gmra.mrb[70].mxu1 %vm1435_vm5, %v2441_v33 }
 0x293   :  { %4880 = vmatpush3.bf16.xpose.msk.msra.mxu1 %vm6326_vm6, %v7225_v44  ;;  %4615 = vmatprep.mubr.msk.f32.mxu1 %vm5286_vm4, %v5287_v25  ;;  %v2542_v37 = vpop.permute.xlu1 %2541 }
 0x294   :  { %4625 = vmatprep.subr.mxu1 %v5287_v25 }
 0x296   :  { %4616 = vmatmul.mubr.msk.f32.gmra.mrb[72].mxu1 %vm1435_vm5, %v2443_v0 }
 0x297   :  { %4618 = vmatprep.mubr.msk.f32.mxu1 %vm5286_vm4, %v5287_v25  ;;  %v2546_v50 = vpop.permute.xlu1 %2545 }
 0x29a   :  { %4619 = vmatmul.mubr.msk.f32.gmra.mrb[74].mxu1 %vm1435_vm5, %v2445_v59 }
 0x29b   :  { %4626 = vmatpush3.xpose.msk.msra.mxu1 %vm1435_vm5, %v6525_v56  ;;  %4627 = vmatprep.mubr.msk.f32.mxu1 %vm5286_vm4, %v5287_v25  ;;  %v2544_v56 = vpop.permute.xlu0 %2543  ;;  %v2645_v29 = vpop.permute.xlu1 %2644 }
 0x29c   :  { %4881 = vmatprep.subr.bf16.mxu1 %v5285_v15 }
 0x29e   :  { %4628 = vmatmul.mubr.msk.f32.vlgmr.msra.gmra.mrb[76].mxu1 %vm1435_vm5, %v2542_v37 }
 0x29f   :  { %4884 = vmatpush3.bf16.xpose.msk.msra.mxu1 %vm6326_vm6, %v7226_v62  ;;  %4630 = vmatprep.mubr.msk.f32.mxu1 %vm5286_vm4, %v5287_v25  ;;  %v2643_v20 = vpop.permute.xlu0 %2642  ;;  %v2744_v47 = vpop.permute.xlu1 %2743 }
 0x2a0   :  { %4640 = vmatprep.subr.mxu1 %v5287_v25 }
 0x2a2   :  { %4631 = vmatmul.mubr.msk.f32.gmra.mrb[78].mxu1 %vm1435_vm5, %v2544_v56 }
 0x2a3   :  { %4633 = vmatprep.mubr.msk.f32.mxu1 %vm5286_vm4, %v5287_v25 }
 0x2a6   :  { %4634 = vmatmul.mubr.msk.f32.gmra.mrb[80].mxu1 %vm1435_vm5, %v2546_v50 }
 0x2a7   :  { %4641 = vmatpush3.xpose.msk.msra.mxu1 %vm1435_vm5, %v6539_v31  ;;  %4642 = vmatprep.mubr.msk.f32.mxu1 %vm5286_vm4, %v5287_v25  ;;  %v2647_v31 = vpop.permute.xlu0 %2646 }
 0x2a8   :  { %4885 = vmatprep.subr.bf16.mxu1 %v5285_v15 }
 0x2aa   :  { %4643 = vmatmul.mubr.msk.f32.vlgmr.msra.gmra.mrb[82].mxu1 %vm1435_vm5, %v2643_v20 }
 0x2ab   :  { %4888 = vmatpush3.bf16.xpose.msk.msra.mxu1 %vm6326_vm6, %v4886_v38  ;;  %4645 = vmatprep.mubr.msk.f32.mxu1 %vm5286_vm4, %v5287_v25  ;;  %v2746_v18 = vpop.permute.xlu0 %2745 }
 0x2ac   :  { %4655 = vmatprep.subr.mxu1 %v5287_v25 }
 0x2ae   :  { %4646 = vmatmul.mubr.msk.f32.gmra.mrb[84].mxu1 %vm1435_vm5, %v2645_v29 }
 0x2af   :  { %4648 = vmatprep.mubr.msk.f32.mxu1 %vm5286_vm4, %v5287_v25  ;;  %v2845_v38 = vpop.permute.xlu0 %2844 }
 0x2b2   :  { %4649 = vmatmul.mubr.msk.f32.gmra.mrb[86].mxu1 %vm1435_vm5, %v2647_v31 }
 0x2b3   :  { %4656 = vmatpush3.xpose.msk.msra.mxu1 %vm1435_vm5, %v6557_v17  ;;  %4657 = vmatprep.mubr.msk.f32.mxu1 %vm5286_vm4, %v5287_v25  ;;  %v2748_v17 = vpop.permute.xlu1 %2747  ;;  %v2849_v43 = vpop.permute.xlu0 %2848 }
 0x2b4   :  { %4889 = vmatprep.subr.bf16.mxu1 %v5285_v15 }
 0x2b6   :  { %4658 = vmatmul.mubr.msk.f32.vlgmr.msra.gmra.mrb[88].mxu1 %vm1435_vm5, %v2744_v47 }
 0x2b7   :  { %4892 = vmatpush3.bf16.xpose.msk.msra.mxu1 %vm6326_vm6, %v4890_v55  ;;  %4660 = vmatprep.mubr.msk.f32.mxu1 %vm5286_vm4, %v5287_v25  ;;  %v2847_v14 = vpop.permute.xlu1 %2846  ;;  %v2948_v55 = vpop.permute.xlu0 %2947 }
 0x2b8   :  { %4670 = vmatprep.subr.mxu1 %v5287_v25 }
 0x2ba   :  { %4661 = vmatmul.mubr.msk.f32.gmra.mrb[90].mxu1 %vm1435_vm5, %v2746_v18 }
 0x2bb   :  { %4663 = vmatprep.mubr.msk.f32.mxu1 %vm5286_vm4, %v5287_v25  ;;  %v2946_v22 = vpop.permute.xlu1 %2945 }
 0x2be   :  { %4664 = vmatmul.mubr.msk.f32.gmra.mrb[92].mxu1 %vm1435_vm5, %v2748_v17 }
 0x2bf   :  { %4671 = vmatpush3.xpose.msk.msra.mxu1 %vm1435_vm5, %v6579_v27  ;;  %4672 = vmatprep.mubr.msk.f32.mxu1 %vm5286_vm4, %v5287_v25  ;;  %v2950_v27 = vpop.permute.xlu1 %2949 }
 0x2c0   :  { %4893 = vmatprep.subr.bf16.mxu1 %v5285_v15 }
 0x2c2   :  { %4673 = vmatmul.mubr.msk.f32.vlgmr.msra.gmra.mrb[94].mxu1 %vm1435_vm5, %v2845_v38 }
 0x2c3   :  { %4896 = vmatpush3.bf16.xpose.msk.msra.mxu1 %vm6326_vm6, %v4894_v1  ;;  %4675 = vmatprep.mubr.msk.f32.mxu1 %vm5286_vm4, %v5287_v25 }
 0x2c4   :  { %4685 = vmatprep.subr.mxu1 %v5287_v25 }
 0x2c6   :  { %4676 = vmatmul.mubr.msk.f32.gmra.mrb[96].mxu1 %vm1435_vm5, %v2847_v14 }
 0x2c7   :  { %4678 = vmatprep.mubr.msk.f32.mxu1 %vm5286_vm4, %v5287_v25 }
 0x2ca   :  { %4679 = vmatmul.mubr.msk.f32.gmra.mrb[98].mxu1 %vm1435_vm5, %v2849_v43 }
 0x2cb   :  { %4686 = vmatpush3.xpose.msk.msra.mxu1 %vm1435_vm5, %v6596_v3  ;;  %4687 = vmatprep.mubr.msk.f32.mxu1 %vm5286_vm4, %v5287_v25 }
 0x2ce   :  { %4688 = vmatmul.mubr.msk.f32.vlgmr.msra.gmra.mrb[100].mxu1 %vm1435_vm5, %v2946_v22 }
 0x2cf   :  { %4690 = vmatprep.mubr.msk.f32.mxu1 %vm5286_vm4, %v5287_v25 }
 0x2d2   :  { %4691 = vmatmul.mubr.msk.f32.gmra.mrb[102].mxu1 %vm1435_vm5, %v2948_v55 }
 0x2d3   :  { %4693 = vmatprep.mubr.msk.f32.mxu1 %vm5286_vm4, %v5287_v25 }
 0x2d6   :  { %4694 = vmatmul.mubr.msk.f32.gmra.mrb[104].mxu1 %vm1435_vm5, %v2950_v27 }
 0x2ed   :  { %v1514_v13 = vpop.f32.mrb[10].mxu1 }
 0x2ee   :  { %v1515_v9 = vadd.f32 %v1514_v13, %v6883_v51  ;;  %v4464_v49 = vpop.f32.mrb[11].mxu1 }
 0x2f0   :  { %v3043_v3 = vsub.f32 0.0, %v1515_v9 }
 0x2f1   :  { %v1519_v1 = vpop.f32.mrb[12].mxu1 }
 0x2f2   :  { %v3091_v12 = vmul.f32 1.442695, %v3043_v3  ;;  %v1520_v48 = vadd.f32 %v1519_v1, %v6889_v16  ;;  %v4467_v8 = vpop.f32.mrb[13].mxu1 }
 0x2f4   :  { %5093 = vpow2.f32 %v3091_v12  ;;  %v3044_v36 = vsub.f32 0.0, %v1520_v48 }
 0x2f5   :  { %v1524_v40 = vpop.f32.mrb[14].mxu1 }
 0x2f6   :  { %v3093_v30 = vmul.f32 1.442695, %v3044_v36  ;;  %v1525_v42 = vadd.f32 %v1524_v40, %v6895_v35  ;;  %v4470_v32 = vpop.f32.mrb[15].mxu1 }
 0x2f8   :  { %5095 = vpow2.f32 %v3093_v30  ;;  %v3045_v10 = vsub.f32 0.0, %v1525_v42 }
 0x2f9   :  { %v1615_v21 = vpop.f32.mrb[16].mxu1 }
 0x2fa   :  { %v3095_v53 = vmul.f32 1.442695, %v3045_v10  ;;  %v1616_v24 = vadd.f32 %v1615_v21, %v6883_v51  ;;  %v4479_v26 = vpop.f32.mrb[17].mxu1 }
 0x2fc   :  { %5097 = vpow2.f32 %v3095_v53  ;;  %v3046_v60 = vsub.f32 0.0, %v1616_v24 }
 0x2fd   :  { %v1620_v28 = vpop.f32.mrb[18].mxu1 }
 0x2fe   :  { %v5094_v19 = vpop.eup %5093  ;;  %v3097_v54 = vmul.f32 1.442695, %v3046_v60  ;;  %v1621_v23 = vadd.f32 %v1620_v28, %v6889_v16  ;;  %v4482_v4 = vpop.f32.mrb[19].mxu1 }
 0x2ff   :  { %v3187_v34 = vadd.f32 1.0, %v5094_v19 }
 0x300   :  { %5099 = vpow2.f32 %v3097_v54  ;;  %v3047_v52 = vsub.f32 0.0, %v1621_v23 }
 0x301   :  { %v1625_v39 = vpop.f32.mrb[20].mxu1  ;;  %5101 = vrcp.f32 %v3187_v34 }
 0x302   :  { %v5096_v58 = vpop.eup %5095  ;;  %v3099_v63 = vmul.f32 1.442695, %v3047_v52  ;;  %v1626_v6 = vadd.f32 %v1625_v39, %v6895_v35  ;;  %v4485_v7 = vpop.f32.mrb[21].mxu1 }
 0x303   :  { %v3188_v5 = vadd.f32 1.0, %v5096_v58 }
 0x304   :  { %5103 = vpow2.f32 %v3099_v63  ;;  %v3048_v41 = vsub.f32 0.0, %v1626_v6 }
 0x305   :  { %5105 = vrcp.f32 %v3188_v5  ;;  %v1716_v2 = vpop.f32.mrb[22].mxu1 }
 0x306   :  { %v5098_v11 = vpop.eup %5097  ;;  %v3101_v46 = vmul.f32 1.442695, %v3048_v41  ;;  %v1717_v45 = vadd.f32 %v1716_v2, %v6883_v51  ;;  %v4494_v61 = vpop.f32.mrb[23].mxu1 }
 0x307   :  { %v3189_v57 = vadd.f32 1.0, %v5098_v11 }
 0x308   :  { %5107 = vpow2.f32 %v3101_v46  ;;  %v3049_v33 = vsub.f32 0.0, %v1717_v45 }
 0x309   :  { %v1721_v44 = vpop.f32.mrb[24].mxu1  ;;  %5109 = vrcp.f32 %v3189_v57 }
 0x30a   :  { %v5100_v0 = vpop.eup %5099  ;;  %v3103_v59 = vmul.f32 1.442695, %v3049_v33  ;;  %v1722_v37 = vadd.f32 %v1721_v44, %v6889_v16  ;;  %v4497_v62 = vpop.f32.mrb[25].mxu1 }
 0x30b   :  { %v3190_v56 = vadd.f32 1.0, %v5100_v0  ;;  %v6903_v20 = vpop.eup %5101 }
 0x30c   :  { %5111 = vpow2.f32 %v3103_v59  ;;  %v3050_v50 = vsub.f32 0.0, %v1722_v37 }
 0x30d   :  { %5113 = vrcp.f32 %v3190_v56  ;;  %v1726_v29 = vpop.f32.mrb[26].mxu1 }
 0x30e   :  { %v5104_v31 = vpop.eup %5103  ;;  %v3105_v47 = vmul.f32 1.442695, %v3050_v50  ;;  %v1727_v18 = vadd.f32 %v1726_v29, %v6895_v35  ;;  %v4500_v17 = vpop.f32.mrb[27].mxu1 }
 0x30f   :  { %v6906_v38 = vpop.eup %5105  ;;  %v3191_v14 = vadd.f32 1.0, %v5104_v31 }
 0x310   :  { %5115 = vpow2.f32 %v3105_v47  ;;  %v3051_v43 = vsub.f32 0.0, %v1727_v18  ;;  %v4900_v22 = vpack.c.bf16 %v6906_v38, %v6903_v20 }
 0x311   :  { %v1817_v55 = vpop.f32.mrb[28].mxu1  ;;  %5117 = vrcp.f32 %v3191_v14 }
 0x312   :  { %v5108_v27 = vpop.eup %5107  ;;  %v3107_v13 = vmul.f32 1.442695, %v3051_v43  ;;  %v1818_v9 = vadd.f32 %v1817_v55, %v6883_v51  ;;  %v4509_v49 = vpop.f32.mrb[29].mxu1 }
 0x313   :  { %v3192_v3 = vadd.f32 1.0, %v5108_v27  ;;  %v6911_v12 = vpop.eup %5109 }
 0x314   :  { %5119 = vpow2.f32 %v3107_v13  ;;  %v3052_v1 = vsub.f32 0.0, %v1818_v9 }
 0x315   :  { %5121 = vrcp.f32 %v3192_v3  ;;  %v1822_v48 = vpop.f32.mrb[30].mxu1 }
 0x316   :  { %v5112_v8 = vpop.eup %5111  ;;  %v3109_v36 = vmul.f32 1.442695, %v3052_v1  ;;  %v1823_v40 = vadd.f32 %v1822_v48, %v6889_v16  ;;  %v4512_v30 = vpop.f32.mrb[31].mxu1 }
 0x317   :  { %v6914_v42 = vpop.eup %5113  ;;  %v3193_v32 = vadd.f32 1.0, %v5112_v8 }
 0x318   :  { %5123 = vpow2.f32 %v3109_v36  ;;  %v3053_v10 = vsub.f32 0.0, %v1823_v40  ;;  %v4906_v21 = vpack.c.bf16 %v6914_v42, %v6911_v12 }
 0x319   :  { %v1827_v53 = vpop.f32.mrb[32].mxu1  ;;  %5125 = vrcp.f32 %v3193_v32 }
 0x31a   :  { %v5116_v24 = vpop.eup %5115  ;;  %v3111_v26 = vmul.f32 1.442695, %v3053_v10  ;;  %v1828_v60 = vadd.f32 %v1827_v53, %v6895_v35  ;;  %v4515_v28 = vpop.f32.mrb[33].mxu1 }
 0x31b   :  { %v3194_v19 = vadd.f32 1.0, %v5116_v24  ;;  %v6919_v23 = vpop.eup %5117 }
 0x31c   :  { %5127 = vpow2.f32 %v3111_v26  ;;  %v3054_v54 = vsub.f32 0.0, %v1828_v60 }
 0x31d   :  { %5129 = vrcp.f32 %v3194_v19  ;;  %v1918_v4 = vpop.f32.mrb[34].mxu1 }
 0x31e   :  { %v5120_v34 = vpop.eup %5119  ;;  %v3113_v52 = vmul.f32 1.442695, %v3054_v54  ;;  %v1919_v39 = vadd.f32 %v1918_v4, %v6883_v51  ;;  %v4524_v58 = vpop.f32.mrb[35].mxu1 }
 0x31f   :  { %v6922_v63 = vpop.eup %5121  ;;  %v3195_v6 = vadd.f32 1.0, %v5120_v34 }
 0x320   :  { %5131 = vpow2.f32 %v3113_v52  ;;  %v3055_v7 = vsub.f32 0.0, %v1919_v39  ;;  %v4912_v5 = vpack.c.bf16 %v6922_v63, %v6919_v23 }
 0x321   :  { %v1923_v41 = vpop.f32.mrb[36].mxu1  ;;  %5133 = vrcp.f32 %v3195_v6 }
 0x322   :  { %v5124_v2 = vpop.eup %5123  ;;  %v3115_v11 = vmul.f32 1.442695, %v3055_v7  ;;  %v1924_v46 = vadd.f32 %v1923_v41, %v6889_v16  ;;  %v4527_v45 = vpop.f32.mrb[37].mxu1 }
 0x323   :  { %v3196_v61 = vadd.f32 1.0, %v5124_v2  ;;  %v6927_v33 = vpop.eup %5125 }
 0x324   :  { %5135 = vpow2.f32 %v3115_v11  ;;  %v3056_v57 = vsub.f32 0.0, %v1924_v46 }
 0x325   :  { %5137 = vrcp.f32 %v3196_v61  ;;  %v1928_v44 = vpop.f32.mrb[38].mxu1 }
 0x326   :  { %v5128_v0 = vpop.eup %5127  ;;  %v3117_v59 = vmul.f32 1.442695, %v3056_v57  ;;  %v1929_v37 = vadd.f32 %v1928_v44, %v6895_v35  ;;  %v4530_v62 = vpop.f32.mrb[39].mxu1 }
 0x327   :  { %v6930_v56 = vpop.eup %5129  ;;  %v3197_v50 = vadd.f32 1.0, %v5128_v0 }
 0x328   :  { %5139 = vpow2.f32 %v3117_v59  ;;  %v3057_v29 = vsub.f32 0.0, %v1929_v37  ;;  %v4918_v31 = vpack.c.bf16 %v6930_v56, %v6927_v33 }
 0x329   :  { %v2019_v47 = vpop.f32.mrb[40].mxu1  ;;  %5141 = vrcp.f32 %v3197_v50 }
 0x32a   :  { %v5132_v18 = vpop.eup %5131  ;;  %v3119_v17 = vmul.f32 1.442695, %v3057_v29  ;;  %v2020_v14 = vadd.f32 %v2019_v47, %v6883_v51  ;;  %v4539_v43 = vpop.f32.mrb[41].mxu1 }
 0x32b   :  { %v3198_v55 = vadd.f32 1.0, %v5132_v18  ;;  %v6935_v13 = vpop.eup %5133 }
 0x32c   :  { %5143 = vpow2.f32 %v3119_v17  ;;  %v3058_v27 = vsub.f32 0.0, %v2020_v14 }
 0x32d   :  { %5145 = vrcp.f32 %v3198_v55  ;;  %v2024_v9 = vpop.f32.mrb[42].mxu1 }
 0x32e   :  { %v5136_v49 = vpop.eup %5135  ;;  %v3121_v3 = vmul.f32 1.442695, %v3058_v27  ;;  %v2025_v1 = vadd.f32 %v2024_v9, %v6889_v16  ;;  %v4542_v48 = vpop.f32.mrb[43].mxu1 }
 0x32f   :  { %v6938_v8 = vpop.eup %5137  ;;  %v3199_v36 = vadd.f32 1.0, %v5136_v49 }
 0x330   :  { %5147 = vpow2.f32 %v3121_v3  ;;  %v3059_v40 = vsub.f32 0.0, %v2025_v1  ;;  %v4924_v30 = vpack.c.bf16 %v6938_v8, %v6935_v13 }
 0x331   :  { %v2029_v32 = vpop.f32.mrb[44].mxu1  ;;  %5149 = vrcp.f32 %v3199_v36 }
 0x332   :  { %v5140_v10 = vpop.eup %5139  ;;  %v3123_v53 = vmul.f32 1.442695, %v3059_v40  ;;  %v2030_v24 = vadd.f32 %v2029_v32, %v6895_v35  ;;  %v4545_v26 = vpop.f32.mrb[45].mxu1 }
 0x333   :  { %v3200_v60 = vadd.f32 1.0, %v5140_v10  ;;  %v6943_v19 = vpop.eup %5141 }
 0x334   :  { %5151 = vpow2.f32 %v3123_v53  ;;  %v3060_v28 = vsub.f32 0.0, %v2030_v24 }
 0x335   :  { %5153 = vrcp.f32 %v3200_v60  ;;  %v2120_v54 = vpop.f32.mrb[46].mxu1 }
 0x336   :  { %v5144_v4 = vpop.eup %5143  ;;  %v3125_v34 = vmul.f32 1.442695, %v3060_v28  ;;  %v2121_v52 = vadd.f32 %v2120_v54, %v6883_v51  ;;  %v4554_v39 = vpop.f32.mrb[47].mxu1 }
 0x337   :  { %v6946_v58 = vpop.eup %5145  ;;  %v3201_v6 = vadd.f32 1.0, %v5144_v4 }
 0x338   :  { %5155 = vpow2.f32 %v3125_v34  ;;  %v3061_v7 = vsub.f32 0.0, %v2121_v52  ;;  %v4930_v41 = vpack.c.bf16 %v6946_v58, %v6943_v19 }
 0x339   :  { %v2125_v2 = vpop.f32.mrb[48].mxu1  ;;  %5157 = vrcp.f32 %v3201_v6  ;;  %v6970_v6 = vld [vmem:[%s7140_s1 + $0x1a0] sm:$0xff] }
 0x33a   :  { %v5148_v11 = vpop.eup %5147  ;;  %v3127_v46 = vmul.f32 1.442695, %v3061_v7  ;;  %v2126_v45 = vadd.f32 %v2125_v2, %v6889_v16  ;;  %v4557_v61 = vpop.f32.mrb[49].mxu1  ;;  %4119 = vmatprep.mubr.msk.f32.mxu1 %vm3286_vm7, %v6970_v6 }
 0x33b   :  { %v3202_v57 = vadd.f32 1.0, %v5148_v11  ;;  %v6951_v0 = vpop.eup %5149 }
 0x33c   :  { %5159 = vpow2.f32 %v3127_v46  ;;  %v3062_v44 = vsub.f32 0.0, %v2126_v45 }
 0x33d   :  { %5161 = vrcp.f32 %v3202_v57  ;;  %v2130_v59 = vpop.f32.mrb[50].mxu1 }
 0x33e   :  { %v5152_v37 = vpop.eup %5151  ;;  %v3129_v62 = vmul.f32 1.442695, %v3062_v44  ;;  %v2131_v50 = vadd.f32 %v2130_v59, %v6895_v35  ;;  %v4560_v29 = vpop.f32.mrb[51].mxu1 }
 0x33f   :  { %v6954_v47 = vpop.eup %5153  ;;  %v3203_v18 = vadd.f32 1.0, %v5152_v37 }
 0x340   :  { %5163 = vpow2.f32 %v3129_v62  ;;  %v3063_v17 = vsub.f32 0.0, %v2131_v50  ;;  %v4936_v14 = vpack.c.bf16 %v6954_v47, %v6951_v0 }
 0x341   :  { %v2221_v43 = vpop.f32.mrb[52].mxu1  ;;  %5165 = vrcp.f32 %v3203_v18 }
 0x342   :  { %v5156_v55 = vpop.eup %5155  ;;  %v3131_v27 = vmul.f32 1.442695, %v3063_v17  ;;  %v2222_v9 = vadd.f32 %v2221_v43, %v6883_v51  ;;  %v4569_v49 = vpop.f32.mrb[53].mxu1 }
 0x343   :  { %v3204_v3 = vadd.f32 1.0, %v5156_v55  ;;  %v6959_v48 = vpop.eup %5157 }
 0x344   :  { %5167 = vpow2.f32 %v3131_v27  ;;  %v3064_v1 = vsub.f32 0.0, %v2222_v9 }
 0x345   :  { %5169 = vrcp.f32 %v3204_v3  ;;  %v2226_v36 = vpop.f32.mrb[54].mxu1 }
 0x346   :  { %v5160_v40 = vpop.eup %5159  ;;  %v3133_v32 = vmul.f32 1.442695, %v3064_v1  ;;  %v2227_v10 = vadd.f32 %v2226_v36, %v6889_v16  ;;  %v4572_v53 = vpop.f32.mrb[55].mxu1 }
 0x347   :  { %v6962_v24 = vpop.eup %5161  ;;  %v3205_v26 = vadd.f32 1.0, %v5160_v40 }
 0x348   :  { %5171 = vpow2.f32 %v3133_v32  ;;  %v3065_v60 = vsub.f32 0.0, %v2227_v10  ;;  %v4942_v28 = vpack.c.bf16 %v6962_v24, %v6959_v48  ;;  %v7056_v48 = vld [vmem:[%s7140_s1 + $0x1a8] sm:$0xff] }
 0x349   :  { %v2231_v54 = vpop.f32.mrb[56].mxu1  ;;  %5173 = vrcp.f32 %v3205_v26 }
 0x34a   :  { %v5164_v4 = vpop.eup %5163  ;;  %v3135_v34 = vmul.f32 1.442695, %v3065_v60  ;;  %v2232_v52 = vadd.f32 %v2231_v54, %v6895_v35  ;;  %v4575_v39 = vpop.f32.mrb[57].mxu1 }
 0x34b   :  { %v3206_v7 = vadd.f32 1.0, %v5164_v4  ;;  %v5166_v11 = vpop.eup %5165 }
 0x34c   :  { %5175 = vpow2.f32 %v3135_v34  ;;  %v3066_v2 = vsub.f32 0.0, %v2232_v52 }
 0x34d   :  { %5177 = vrcp.f32 %v3206_v7  ;;  %v2322_v46 = vpop.f32.mrb[58].mxu1 }
 0x34e   :  { %v5168_v45 = vpop.eup %5167  ;;  %v3137_v61 = vmul.f32 1.442695, %v3066_v2  ;;  %v2323_v57 = vadd.f32 %v2322_v46, %v6883_v51  ;;  %v4584_v44 = vpop.f32.mrb[59].mxu1 }
 0x34f   :  { %v5170_v59 = vpop.eup %5169  ;;  %v3207_v37 = vadd.f32 1.0, %v5168_v45 }
 0x350   :  { %5179 = vpow2.f32 %v3137_v61  ;;  %v3067_v50 = vsub.f32 0.0, %v2323_v57  ;;  %v4897_v29 = vpack.c.bf16 %v5170_v59, %v5166_v11 }
 0x351   :  { %v2327_v18 = vpop.f32.mrb[60].mxu1  ;;  %5181 = vrcp.f32 %v3207_v37 }
 0x352   :  { %v5172_v17 = vpop.eup %5171  ;;  %v3139_v43 = vmul.f32 1.442695, %v3067_v50  ;;  %v2328_v55 = vadd.f32 %v2327_v18, %v6889_v16  ;;  %v4587_v27 = vpop.f32.mrb[61].mxu1  ;;  %4899 = vmatprep.subr.msk.bf16.mxu1 %vm6977_vm8, %v4897_v29 }
 0x353   :  { %v3208_v9 = vadd.f32 1.0, %v5172_v17  ;;  %4902 = vmatpush3.bf16.xpose.msk.msra.mxu1 %vm6977_vm8, %v4900_v22  ;;  %v5174_v3 = vpop.eup %5173 }
 0x354   :  { %5183 = vpow2.f32 %v3139_v43  ;;  %v3068_v49 = vsub.f32 0.0, %v2328_v55 }
 0x355   :  { %5185 = vrcp.f32 %v3208_v9  ;;  %v2332_v1 = vpop.f32.mrb[62].mxu1 }
 0x356   :  { %v5176_v36 = vpop.eup %5175  ;;  %v3141_v40 = vmul.f32 1.442695, %v3068_v49  ;;  %v2333_v32 = vadd.f32 %v2332_v1, %v6895_v35  ;;  %v4590_v10 = vpop.f32.mrb[63].mxu1 }
 0x357   :  { %v5178_v53 = vpop.eup %5177  ;;  %v3209_v26 = vadd.f32 1.0, %v5176_v36 }
 0x358   :  { %5187 = vpow2.f32 %v3141_v40  ;;  %v3069_v60 = vsub.f32 0.0, %v2333_v32  ;;  %v4903_v54 = vpack.c.bf16 %v5178_v53, %v5174_v3 }
 0x359   :  { %v2423_v4 = vpop.f32.mrb[64].mxu1  ;;  %5189 = vrcp.f32 %v3209_v26 }
 0x35a   :  { %v5180_v20 = vpop.eup %5179  ;;  %v3143_v38 = vmul.f32 1.442695, %v3069_v60  ;;  %v2424_v22 = vadd.f32 %v2423_v4, %v6883_v51  ;;  %v4599_v34 = vpop.f32.mrb[65].mxu1  ;;  %4905 = vmatprep.subr.msk.bf16.mxu1 %vm6977_vm8, %v4903_v54 }
 0x35b   :  { %v3210_v52 = vadd.f32 1.0, %v5180_v20  ;;  %4908 = vmatpush3.bf16.xpose.msk.msra.mxu1 %vm6977_vm8, %v4906_v21  ;;  %v5182_v7 = vpop.eup %5181 }
 0x35c   :  { %5191 = vpow2.f32 %v3143_v38  ;;  %v3070_v39 = vsub.f32 0.0, %v2424_v22 }
 0x35d   :  { %5193 = vrcp.f32 %v3210_v52  ;;  %v2428_v2 = vpop.f32.mrb[66].mxu1 }
 0x35e   :  { %v5184_v11 = vpop.eup %5183  ;;  %v3145_v46 = vmul.f32 1.442695, %v3070_v39  ;;  %v2429_v45 = vadd.f32 %v2428_v2, %v6889_v16  ;;  %v4602_v61 = vpop.f32.mrb[67].mxu1 }
 0x35f   :  { %v5186_v57 = vpop.eup %5185  ;;  %v3211_v44 = vadd.f32 1.0, %v5184_v11 }
 0x360   :  { %5195 = vpow2.f32 %v3145_v46  ;;  %v3071_v59 = vsub.f32 0.0, %v2429_v45  ;;  %v4909_v37 = vpack.c.bf16 %v5186_v57, %v5182_v7 }
 0x361   :  { %v2433_v50 = vpop.f32.mrb[68].mxu1  ;;  %5197 = vrcp.f32 %v3211_v44 }
 0x362   :  { %v5188_v12 = vpop.eup %5187  ;;  %v3147_v42 = vmul.f32 1.442695, %v3071_v59  ;;  %v2434_v21 = vadd.f32 %v2433_v50, %v6895_v35  ;;  %v4605_v29 = vpop.f32.mrb[69].mxu1  ;;  %4911 = vmatprep.subr.msk.bf16.mxu1 %vm6977_vm8, %v4909_v37 }
 0x363   :  { %v3212_v18 = vadd.f32 1.0, %v5188_v12  ;;  %4914 = vmatpush3.bf16.xpose.msk.msra.mxu1 %vm6977_vm8, %v4912_v5  ;;  %v5190_v43 = vpop.eup %5189 }
 0x364   :  { %5199 = vpow2.f32 %v3147_v42  ;;  %v3072_v17 = vsub.f32 0.0, %v2434_v21 }
 0x365   :  { %5201 = vrcp.f32 %v3212_v18  ;;  %v2524_v55 = vpop.f32.mrb[70].mxu1 }
 0x366   :  { %v5192_v27 = vpop.eup %5191  ;;  %v3149_v9 = vmul.f32 1.442695, %v3072_v17  ;;  %v2525_v49 = vadd.f32 %v2524_v55, %v6883_v51  ;;  %v4614_v3 = vpop.f32.mrb[71].mxu1 }
 0x367   :  { %v5194_v1 = vpop.eup %5193  ;;  %v3213_v36 = vadd.f32 1.0, %v5192_v27 }
 0x368   :  { %5203 = vpow2.f32 %v3149_v9  ;;  %v3073_v40 = vsub.f32 0.0, %v2525_v49  ;;  %v4915_v32 = vpack.c.bf16 %v5194_v1, %v5190_v43 }
 0x369   :  { %v2529_v10 = vpop.f32.mrb[72].mxu1  ;;  %5205 = vrcp.f32 %v3213_v36 }
 0x36a   :  { %v5196_v23 = vpop.eup %5195  ;;  %v3151_v63 = vmul.f32 1.442695, %v3073_v40  ;;  %v2530_v5 = vadd.f32 %v2529_v10, %v6889_v16  ;;  %v4617_v53 = vpop.f32.mrb[73].mxu1  ;;  %4917 = vmatprep.subr.msk.bf16.mxu1 %vm6977_vm8, %v4915_v32 }
 0x36b   :  { %v3214_v26 = vadd.f32 1.0, %v5196_v23  ;;  %4920 = vmatpush3.bf16.xpose.msk.msra.mxu1 %vm6977_vm8, %v4918_v31  ;;  %v5198_v54 = vpop.eup %5197 }
 0x36c   :  { %5207 = vpow2.f32 %v3151_v63  ;;  %v3074_v60 = vsub.f32 0.0, %v2530_v5 }
 0x36d   :  { %5209 = vrcp.f32 %v3214_v26  ;;  %v2534_v4 = vpop.f32.mrb[74].mxu1 }
 0x36e   :  { %v5200_v20 = vpop.eup %5199  ;;  %v3153_v38 = vmul.f32 1.442695, %v3074_v60  ;;  %v2535_v22 = vadd.f32 %v2534_v4, %v6895_v35  ;;  %v4620_v34 = vpop.f32.mrb[75].mxu1 }
 0x36f   :  { %v5202_v52 = vpop.eup %5201  ;;  %v3215_v39 = vadd.f32 1.0, %v5200_v20 }
 0x370   :  { %5211 = vpow2.f32 %v3153_v38  ;;  %v3075_v7 = vsub.f32 0.0, %v2535_v22  ;;  %v4921_v2 = vpack.c.bf16 %v5202_v52, %v5198_v54 }
 0x371   :  { %v2625_v11 = vpop.f32.mrb[76].mxu1  ;;  %5213 = vrcp.f32 %v3215_v39 }
 0x372   :  { %v5204_v33 = vpop.eup %5203  ;;  %v3155_v56 = vmul.f32 1.442695, %v3075_v7  ;;  %v2626_v31 = vadd.f32 %v2625_v11, %v6883_v51  ;;  %v4629_v46 = vpop.f32.mrb[77].mxu1  ;;  %4923 = vmatprep.subr.msk.bf16.mxu1 %vm6977_vm8, %v4921_v2 }
 0x373   :  { %v3216_v45 = vadd.f32 1.0, %v5204_v33  ;;  %4926 = vmatpush3.bf16.xpose.msk.msra.mxu1 %vm6977_vm8, %v4924_v30  ;;  %v5206_v57 = vpop.eup %5205 }
 0x374   :  { %5215 = vpow2.f32 %v3155_v56  ;;  %v3076_v61 = vsub.f32 0.0, %v2626_v31 }
 0x375   :  { %5217 = vrcp.f32 %v3216_v45  ;;  %v2630_v44 = vpop.f32.mrb[78].mxu1 }
 0x376   :  { %v5208_v59 = vpop.eup %5207  ;;  %v3157_v37 = vmul.f32 1.442695, %v3076_v61  ;;  %v2631_v50 = vadd.f32 %v2630_v44, %v6889_v16  ;;  %v4632_v12 = vpop.f32.mrb[79].mxu1 }
 0x377   :  { %v5210_v42 = vpop.eup %5209  ;;  %v3217_v21 = vadd.f32 1.0, %v5208_v59 }
 0x378   :  { %5219 = vpow2.f32 %v3157_v37  ;;  %v3077_v29 = vsub.f32 0.0, %v2631_v50  ;;  %v4927_v18 = vpack.c.bf16 %v5210_v42, %v5206_v57 }
 0x379   :  { %v2635_v17 = vpop.f32.mrb[80].mxu1  ;;  %5221 = vrcp.f32 %v3217_v21 }
 0x37a   :  { %v5212_v13 = vpop.eup %5211  ;;  %v3159_v8 = vmul.f32 1.442695, %v3077_v29  ;;  %v2636_v30 = vadd.f32 %v2635_v17, %v6895_v35  ;;  %v4635_v43 = vpop.f32.mrb[81].mxu1  ;;  %4929 = vmatprep.subr.msk.bf16.mxu1 %vm6977_vm8, %v4927_v18 }
 0x37b   :  { %v3218_v55 = vadd.f32 1.0, %v5212_v13  ;;  %4932 = vmatpush3.bf16.xpose.msk.msra.mxu1 %vm6977_vm8, %v4930_v41  ;;  %v5214_v9 = vpop.eup %5213 }
 0x37c   :  { %5223 = vpow2.f32 %v3159_v8  ;;  %v3078_v27 = vsub.f32 0.0, %v2636_v30  ;;  %v7069_v8 = vld [vmem:[%s7140_s1 + $0x1b0] sm:$0xff] }
 0x37d   :  { %5225 = vrcp.f32 %v3218_v55  ;;  %v2726_v49 = vpop.f32.mrb[82].mxu1 }
 0x37e   :  { %v5216_v3 = vpop.eup %5215  ;;  %v3161_v1 = vmul.f32 1.442695, %v3078_v27  ;;  %v2727_v36 = vadd.f32 %v2726_v49, %v6883_v51  ;;  %v4644_v40 = vpop.f32.mrb[83].mxu1 }
 0x37f   :  { %v5218_v32 = vpop.eup %5217  ;;  %v3219_v10 = vadd.f32 1.0, %v5216_v3 }
 0x380   :  { %5227 = vpow2.f32 %v3161_v1  ;;  %v3079_v23 = vsub.f32 0.0, %v2727_v36  ;;  %v4933_v63 = vpack.c.bf16 %v5218_v32, %v5214_v9 }
 0x381   :  { %v2731_v5 = vpop.f32.mrb[84].mxu1  ;;  %5229 = vrcp.f32 %v3219_v10 }
 0x382   :  { %v5220_v19 = vpop.eup %5219  ;;  %v3163_v58 = vmul.f32 1.442695, %v3079_v23  ;;  %v2732_v41 = vadd.f32 %v2731_v5, %v6889_v16  ;;  %v4647_v53 = vpop.f32.mrb[85].mxu1  ;;  %4935 = vmatprep.subr.msk.bf16.mxu1 %vm6977_vm8, %v4933_v63 }
 0x383   :  { %v3220_v26 = vadd.f32 1.0, %v5220_v19  ;;  %4938 = vmatpush3.bf16.xpose.msk.msra.mxu1 %vm6977_vm8, %v4936_v14  ;;  %v5222_v54 = vpop.eup %5221 }
 0x384   :  { %5231 = vpow2.f32 %v3163_v58  ;;  %v3080_v60 = vsub.f32 0.0, %v2732_v41 }
 0x385   :  { %5233 = vrcp.f32 %v3220_v26  ;;  %v2736_v4 = vpop.f32.mrb[86].mxu1 }
 0x386   :  { %v5224_v20 = vpop.eup %5223  ;;  %v3165_v38 = vmul.f32 1.442695, %v3080_v60  ;;  %v2737_v22 = vadd.f32 %v2736_v4, %v6895_v35  ;;  %v4650_v34 = vpop.f32.mrb[87].mxu1 }
 0x387   :  { %v5226_v52 = vpop.eup %5225  ;;  %v3221_v39 = vadd.f32 1.0, %v5224_v20 }
 0x388   :  { %5235 = vpow2.f32 %v3165_v38  ;;  %v3081_v7 = vsub.f32 0.0, %v2737_v22  ;;  %v4939_v2 = vpack.c.bf16 %v5226_v52, %v5222_v54 }
 0x389   :  { %v2827_v11 = vpop.f32.mrb[88].mxu1  ;;  %5237 = vrcp.f32 %v3221_v39 }
 0x38a   :  { %v5228_v0 = vpop.eup %5227  ;;  %v3167_v47 = vmul.f32 1.442695, %v3081_v7  ;;  %v2828_v14 = vadd.f32 %v2827_v11, %v6883_v51  ;;  %v4659_v33 = vpop.f32.mrb[89].mxu1  ;;  %4941 = vmatprep.subr.msk.bf16.mxu1 %vm6977_vm8, %v4939_v2 }
 0x38b   :  { %v3222_v56 = vadd.f32 1.0, %v5228_v0  ;;  %4944 = vmatpush3.bf16.xpose.msk.msra.mxu1 %vm6977_vm8, %v4942_v28  ;;  %v5230_v46 = vpop.eup %5229 }
 0x38c   :  { %5239 = vpow2.f32 %v3167_v47  ;;  %v3082_v31 = vsub.f32 0.0, %v2828_v14 }
 0x38d   :  { %5241 = vrcp.f32 %v3222_v56  ;;  %v2832_v45 = vpop.f32.mrb[90].mxu1 }
 0x38e   :  { %v5232_v61 = vpop.eup %5231  ;;  %v3169_v57 = vmul.f32 1.442695, %v3082_v31  ;;  %v2833_v44 = vadd.f32 %v2832_v45, %v6889_v16  ;;  %v4662_v59 = vpop.f32.mrb[91].mxu1 }
 0x38f   :  { %v5234_v37 = vpop.eup %5233  ;;  %v3223_v50 = vadd.f32 1.0, %v5232_v61 }
 0x390   :  { %5243 = vpow2.f32 %v3169_v57  ;;  %v3083_v12 = vsub.f32 0.0, %v2833_v44  ;;  %v4946_v42 = vpack.c.bf16 %v5234_v37, %v5230_v46 }
 0x391   :  { %v2837_v24 = vpop.f32.mrb[92].mxu1  ;;  %5245 = vrcp.f32 %v3223_v50 }
 0x392   :  { %v5236_v28 = vpop.eup %5235  ;;  %v3171_v21 = vmul.f32 1.442695, %v3083_v12  ;;  %v2838_v29 = vadd.f32 %v2837_v24, %v6895_v35  ;;  %v4665_v18 = vpop.f32.mrb[93].mxu1  ;;  %4948 = vmatpush3.bf16.xpose.msk.msra.mxu0 %vm6977_vm8, %v4946_v42  ;;  %4120 = vmatmul.mubr.msk.f32.vlgmr.msra.gmra.mrb[106].mxu1 %vm3286_vm7, %v6970_v6 }
 0x393   :  { %v3224_v17 = vadd.f32 1.0, %v5236_v28  ;;  %4949 = vmatprep.subr.bf16.mxu0 %v5285_v15  ;;  %4121 = vmatprep.mubr.msk.f32.mxu1 %vm3286_vm7, %v7056_v48  ;;  %v5238_v30 = vpop.eup %5237 }
 0x394   :  { %5247 = vpow2.f32 %v3171_v21  ;;  %v3084_v13 = vsub.f32 0.0, %v2838_v29 }
 0x395   :  { %5249 = vrcp.f32 %v3224_v17  ;;  %v2928_v43 = vpop.f32.mrb[94].mxu1 }
 0x396   :  { %v5240_v55 = vpop.eup %5239  ;;  %v3173_v27 = vmul.f32 1.442695, %v3084_v13  ;;  %v2929_v9 = vadd.f32 %v2928_v43, %v6883_v51  ;;  %v4674_v49 = vpop.f32.mrb[95].mxu1  ;;  %4122 = vmatmul.mubr.msk.f32.gmra.mrb[108].mxu1 %vm3286_vm7, %v7056_v48 }
 0x397   :  { %v5242_v3 = vpop.eup %5241  ;;  %v3225_v1 = vadd.f32 1.0, %v5240_v55  ;;  %4123 = vmatprep.mubr.msk.f32.mxu1 %vm3286_vm7, %v7069_v8 }
 0x398   :  { %5251 = vpow2.f32 %v3173_v27  ;;  %v3085_v36 = vsub.f32 0.0, %v2929_v9  ;;  %v4950_v40 = vpack.c.bf16 %v5242_v3, %v5238_v30 }
 0x399   :  { %v2933_v32 = vpop.f32.mrb[96].mxu1  ;;  %5253 = vrcp.f32 %v3225_v1 }
 0x39a   :  { %v5244_v10 = vpop.eup %5243  ;;  %v3175_v23 = vmul.f32 1.442695, %v3085_v36  ;;  %v2934_v63 = vadd.f32 %v2933_v32, %v6889_v16  ;;  %v4677_v5 = vpop.f32.mrb[97].mxu1  ;;  %4952 = vmatpush3.bf16.xpose.msk.msra.mxu0 %vm6977_vm8, %v4950_v40  ;;  %4124 = vmatmul.mubr.msk.f32.gmra.mrb[110].mxu1 %vm3286_vm7, %v7069_v8 }
 0x39b   :  { %v3226_v19 = vadd.f32 1.0, %v5244_v10  ;;  %4953 = vmatprep.subr.bf16.mxu0 %v5285_v15  ;;  %v5246_v41 = vpop.eup %5245 }
 0x39c   :  { %5255 = vpow2.f32 %v3175_v23  ;;  %v3086_v58 = vsub.f32 0.0, %v2934_v63 }
 0x39d   :  { %5257 = vrcp.f32 %v3226_v19  ;;  %v2938_v53 = vpop.f32.mrb[98].mxu1 }
 0x39e   :  { %v5248_v26 = vpop.eup %5247  ;;  %v3177_v60 = vmul.f32 1.442695, %v3086_v58  ;;  %v2939_v54 = vadd.f32 %v2938_v53, %v6895_v35  ;;  %v4680_v4 = vpop.f32.mrb[99].mxu1 }
 0x39f   :  { %v5250_v20 = vpop.eup %5249  ;;  %v3227_v38 = vadd.f32 1.0, %v5248_v26 }
 0x3a0   :  { %5259 = vpow2.f32 %v3177_v60  ;;  %v3087_v22 = vsub.f32 0.0, %v2939_v54  ;;  %v4954_v34 = vpack.c.bf16 %v5250_v20, %v5246_v41 }
 0x3a1   :  { %v3029_v52 = vpop.f32.mrb[100].mxu1  ;;  %5261 = vrcp.f32 %v3227_v38 }
 0x3a2   :  { %v5252_v39 = vpop.eup %5251  ;;  %v3179_v7 = vmul.f32 1.442695, %v3087_v22  ;;  %v3030_v2 = vadd.f32 %v3029_v52, %v6883_v51  ;;  %v4689_v11 = vpop.f32.mrb[101].mxu1  ;;  %4956 = vmatpush3.bf16.xpose.msk.msra.mxu0 %vm6977_vm8, %v4954_v34 }
 0x3a3   :  { %v3228_v0 = vadd.f32 1.0, %v5252_v39  ;;  %4957 = vmatprep.subr.bf16.mxu0 %v5285_v15  ;;  %v5254_v14 = vpop.eup %5253 }
 0x3a4   :  { %5263 = vpow2.f32 %v3179_v7  ;;  %v3088_v47 = vsub.f32 0.0, %v3030_v2 }
 0x3a5   :  { %5265 = vrcp.f32 %v3228_v0  ;;  %v3034_v33 = vpop.f32.mrb[102].mxu1 }
 0x3a6   :  { %v5256_v56 = vpop.eup %5255  ;;  %v3181_v31 = vmul.f32 1.442695, %v3088_v47  ;;  %v3035_v46 = vadd.f32 %v3034_v33, %v6889_v16  ;;  %v4692_v45 = vpop.f32.mrb[103].mxu1 }
 0x3a7   :  { %v5258_v61 = vpop.eup %5257  ;;  %v3229_v51 = vadd.f32 1.0, %v5256_v56 }
 0x3a8   :  { %5267 = vpow2.f32 %v3181_v31  ;;  %v3089_v57 = vsub.f32 0.0, %v3035_v46  ;;  %v4958_v44 = vpack.c.bf16 %v5258_v61, %v5254_v14 }
 0x3a9   :  { %v3039_v59 = vpop.f32.mrb[104].mxu1  ;;  %5269 = vrcp.f32 %v3229_v51 }
 0x3aa   :  { %v5260_v37 = vpop.eup %5259  ;;  %v3183_v50 = vmul.f32 1.442695, %v3089_v57  ;;  %v3040_v12 = vadd.f32 %v3039_v59, %v6895_v35  ;;  %v4695_v42 = vpop.f32.mrb[105].mxu1  ;;  %4960 = vmatpush3.bf16.xpose.msk.msra.mxu0 %vm6977_vm8, %v4958_v44 }
 0x3ab   :  { %v3230_v24 = vadd.f32 1.0, %v5260_v37  ;;  %4961 = vmatprep.subr.bf16.mxu0 %v5285_v15  ;;  %v5262_v28 = vpop.eup %5261 }
 0x3ac   :  { %5271 = vpow2.f32 %v3183_v50  ;;  %v3090_v16 = vsub.f32 0.0, %v3040_v12 }
 0x3ad   :  { %5273 = vrcp.f32 %v3230_v24 }
 0x3ae   :  { %v5264_v21 = vpop.eup %5263  ;;  %v3185_v29 = vmul.f32 1.442695, %v3090_v16 }
 0x3af   :  { %v5266_v18 = vpop.eup %5265  ;;  %v3231_v17 = vadd.f32 1.0, %v5264_v21 }
 0x3b0   :  { %5275 = vpow2.f32 %v3185_v29  ;;  %v4962_v13 = vpack.c.bf16 %v5266_v18, %v5262_v28 }
 0x3b1   :  { %5277 = vrcp.f32 %v3231_v17 }
 0x3b2   :  { %v5268_v30 = vpop.eup %5267  ;;  %4964 = vmatpush3.bf16.xpose.msk.msra.mxu0 %vm6977_vm8, %v4962_v13 }
 0x3b3   :  { %v3232_v35 = vadd.f32 1.0, %v5268_v30  ;;  %4965 = vmatprep.subr.bf16.mxu0 %v5285_v15  ;;  %v5270_v43 = vpop.eup %5269 }
 0x3b5   :  { %5279 = vrcp.f32 %v3232_v35 }
 0x3b6   :  { %v5272_v55 = vpop.eup %5271 }
 0x3b7   :  { %v5274_v27 = vpop.eup %5273  ;;  %v3233_v9 = vadd.f32 1.0, %v5272_v55 }
 0x3b8   :  { %v4966_v49 = vpack.c.bf16 %v5274_v27, %v5270_v43 }
 0x3b9   :  { %5281 = vrcp.f32 %v3233_v9 }
 0x3ba   :  { %v5276_v3 = vpop.eup %5275  ;;  %4968 = vmatpush3.bf16.xpose.msk.msra.mxu0 %vm6977_vm8, %v4966_v49 }
 0x3bb   :  { %v3234_v1 = vadd.f32 1.0, %v5276_v3  ;;  %4969 = vmatprep.subr.bf16.mxu0 %v5285_v15  ;;  %v5278_v36 = vpop.eup %5277 }
 0x3bd   :  { %5283 = vrcp.f32 %v3234_v1 }
 0x3bf   :  { %v5280_v40 = vpop.eup %5279 }
 0x3c0   :  { %v4970_v32 = vpack.c.bf16 %v5280_v40, %v5278_v36 }
 0x3c2   :  { %4972 = vmatpush3.bf16.xpose.msk.msra.mxu0 %vm6977_vm8, %v4970_v32 }
 0x3c3   :  { %4973 = vmatprep.subr.bf16.mxu0 %v5285_v15  ;;  %v5282_v10 = vpop.eup %5281 }
 0x3c7   :  { %v5284_v23 = vpop.eup %5283 }
 0x3c8   :  { %v4974_v63 = vpack.c.bf16 %v5284_v23, %v5282_v10 }
 0x3ca   :  { %4976 = vmatpush3.bf16.xpose.msk.msra.mxu0 %vm6977_vm8, %v4974_v63 }
 0x3d1   :  { %4729 = vmatmul.mubr.msk.f32.vlgmr.msra.gmra.mrb[48].mxu0 %vm3286_vm7, %v6970_v6 }
 0x3d2   :  { %4731 = vmatprep.mubr.msk.f32.mxu0 %vm5286_vm4, %v5287_v25 }
 0x3d5   :  { %4732 = vmatmul.mubr.msk.f32.gmra.mrb[50].mxu0 %vm3286_vm7, %v7056_v48 }
 0x3d6   :  { %4734 = vmatprep.mubr.msk.f32.mxu0 %vm5286_vm4, %v5287_v25 }
 0x3d9   :  { %4735 = vmatmul.mubr.msk.f32.gmra.mrb[52].mxu0 %vm3286_vm7, %v7069_v8 }
 0x465   :  { %v3506_v15 = vpop.f32.mrb[106].mxu1 }
 0x466   :  { %3603 = vst [vmem:[%s7142_s2] sm:$0xff] %v3506_v15  ;;  %v3508_v62 = vpop.f32.mrb[107].mxu1 }
 0x467   :  { %3604 = vst [vmem:[%s7142_s2 + $0x8] sm:$0xff] %v3508_v62 }
 0x469   :  { %v3512_v6 = vpop.f32.mrb[108].mxu1 }
 0x46a   :  { %3606 = vst [vmem:[%s7142_s2 + $0x18] sm:$0xff] %v3512_v6  ;;  %v3514_v48 = vpop.f32.mrb[109].mxu1 }
 0x46b   :  { %3607 = vst [vmem:[%s7142_s2 + $0x20] sm:$0xff] %v3514_v48 }
 0x46d   :  { %v3518_v25 = vpop.f32.mrb[110].mxu1 }
 0x46e   :  { %3609 = vst [vmem:[%s7142_s2 + $0x30] sm:$0xff] %v3518_v25  ;;  %v3520_v8 = vpop.f32.mrb[111].mxu1 }
 0x46f   :  { %3610 = vst [vmem:[%s7142_s2 + $0x38] sm:$0xff] %v3520_v8 }
 0x4a4   :  { %v3589_v5 = vpop.f32.mrb[48].mxu0 }
 0x4a5   :  { %3605 = vst [vmem:[%s7142_s2 + $0x10] sm:$0xff] %v3589_v5  ;;  %v4730_v19 = vpop.f32.mrb[49].mxu0 }
 0x4a8   :  { %v3594_v58 = vpop.f32.mrb[50].mxu0 }
 0x4a9   :  { %3608 = vst [vmem:[%s7142_s2 + $0x28] sm:$0xff] %v3594_v58  ;;  %v4733_v41 = vpop.f32.mrb[51].mxu0 }
 0x4ac   :  { %v3599_v53 = vpop.f32.mrb[52].mxu0 }
 0x4ad   :  { %3611 = vst [vmem:[%s7142_s2 + $0x40] sm:$0xff] %v3599_v53  ;;  %v4736_v26 = vpop.f32.mrb[53].mxu0 }

</bundles_post_ra>
